<compile_context>
chip_gen: v7x
topology: tpu7x:2x2x1
jax: 0.10.0
libtpu: 0.0.40
codegen_flags: <defaults>
</compile_context>

<pallas_src>
import functools

import jax
import jax.numpy as jnp
from jax import lax
from jax.experimental import pallas as pl
from jax.experimental.pallas import tpu as pltpu


def _doubler_kernel(x_ref, w_ref, b_ref, o_ref, *,
                    H, W, Wz, C_in, C_out, K, T, neg_slope):
    """One batch element per grid step.

    x_ref: (1, C_in, Hz*Wz)    zero-interleaved, padded, flattened input.
    w_ref: (2*C_out, T*K*C_in) fused weights, rows = (ph, co), cols = (t, kw, ci).
    b_ref: (2*C_out, 1)        bias replicated over the two output-row phases.
    o_ref: (1, C_out, 4*H*W)   final output, flattened (== (C_out, 2H, 2W) row-major).
    """
    Lg = H * Wz                      # GEMM lane axis: (y, q) flattened, q in [0, Wz)
    C2 = 2 * C_out

    # Bias init (added once per output element), f32 accumulation.
    acc = jnp.broadcast_to(b_ref[...].astype(jnp.float32), (C2, Lg))

    # Sum of T*K tap GEMMs; each tap is a static lane-offset window of the
    # VMEM-resident input block (no extra HBM traffic, no structural zero rows).
    for t in range(T):
        for kw in range(K):
            j = t * K + kw
            off = t * Wz + kw
            x_tap = x_ref[0, :, off:off + Lg]                        # (C_in, Lg)
            w_blk = w_ref[:, j * C_in:(j + 1) * C_in]                # (C2, C_in)
            acc = acc + jnp.dot(w_blk, x_tap,
                                preferred_element_type=jnp.float32)

    # LeakyReLU on the f32 accumulator, then cast once.
    acc = jnp.where(acc >= 0, acc, neg_slope * acc)
    acc = acc.astype(o_ref.dtype)

    # Fused depth-to-space: acc row block ph at lanes [y*Wz, y*Wz + 2W) is the final
    # output row 2*y + ph.  All offsets are static; stores are plain lane-window
    # stores into the lane-dense output block.
    W2 = 2 * W
    for y in range(H):
        src = y * Wz
        row = acc[:, src:src + W2]                                   # (2*C_out, 2W)
        d0 = (2 * y) * W2
        d1 = (2 * y + 1) * W2
        o_ref[0, :, d0:d0 + W2] = row[:C_out]
        o_ref[0, :, d1:d1 + W2] = row[C_out:]


def cnn_doubler_forward(x, w_t, bias, *, kernel_size, neg_slope=0.01,
                        compute_dtype=None):
    """ConvTranspose2d(C_in, C_out, K, stride=2, padding=K//2-1) + LeakyReLU.

    x:    (N, C_in, H, W)
    w_t:  (C_in, C_out, K, K)   (PyTorch ConvTranspose2d weight layout)
    bias: (C_out,)
    """
    N, C_in, H, W = x.shape
    C_in_w, C_out, K, K2 = w_t.shape
    assert C_in == C_in_w and K == K2 == kernel_size
    assert K % 2 == 0 and K >= 2, "CNNDoubler padding math requires even kernel_size >= 2"

    P = K // 2           # = K - 1 - padding of the zero-inserted correlation form

    # Row-phase decomposition: output row 2*y + ph reads input rows y + dh with
    # dh = (ph + kh - P)//2 for kernel rows kh of matching parity.
    offs = [(ph + kh - P) // 2
            for ph in range(2) for kh in range(K) if (kh + ph + P) % 2 == 0]
    dmin, dmax = min(offs), max(offs)
    T = dmax - dmin + 1
    pad_top = -dmin

    # Zero-interleaved padded input:
    #   xz[n, ci, r, q] = x[n, ci, r + dmin, (q - P)//2] if (q - P) even & in range else 0
    # Columns keep the stride-2 zero structure (the width phase is selected
    # automatically by which lanes are nonzero); rows are compressed to the T useful
    # offsets.  One extra guard row keeps all in-kernel tap windows in bounds.
    Wz = 2 * W + K
    Hz = H + T
    xz = jnp.zeros((N, C_in, Hz, Wz), x.dtype)
    xz = xz.at[:, :, pad_top:pad_top + H, P:P + 2 * W:2].set(x)
    xz_flat = xz.reshape(N, C_in, Hz * Wz)

    # Correlation-equivalent weight of the transposed conv:
    #   w_conv[co, ci, kh, kw] = w_t[ci, co, K-1-kh, K-1-kw]
    w_conv = jnp.flip(jnp.transpose(w_t, (1, 0, 2, 3)), axis=(2, 3))

    # Fused weight: rows = (ph, co), cols = (t, kw, ci); kh = 2*(dmin + t) + P - ph.
    zero_blk = jnp.zeros((C_out, C_in), w_conv.dtype)
    rows = []
    for ph in range(2):
        cols = []
        for t in range(T):
            kh = 2 * (dmin + t) + P - ph
            for kw in range(K):
                cols.append(w_conv[:, :, kh, kw] if 0 <= kh < K else zero_blk)
        rows.append(jnp.concatenate(cols, axis=1))          # (C_out, T*K*C_in)
    w_mat = jnp.concatenate(rows, axis=0)                    # (2*C_out, T*K*C_in)

    b_mat = jnp.tile(bias, 2).reshape(2 * C_out, 1).astype(jnp.float32)

    if compute_dtype is not None:      # bf16 streaming for the MXU; f32 accumulation
        xz_flat = xz_flat.astype(compute_dtype)
        w_mat = w_mat.astype(compute_dtype)

    C2 = 2 * C_out
    Dz = T * K * C_in
    HW4 = 4 * H * W

    kernel = functools.partial(
        _doubler_kernel, H=H, W=W, Wz=Wz, C_in=C_in, C_out=C_out, K=K, T=T,
        neg_slope=neg_slope)

    out_flat = pl.pallas_call(
        kernel,
        out_shape=jax.ShapeDtypeStruct((N, C_out, HW4), x.dtype),
        grid=(N,),
        in_specs=[
            pl.BlockSpec((1, C_in, Hz * Wz), lambda n: (n, 0, 0)),
            pl.BlockSpec((C2, Dz), lambda n: (0, 0)),        # resident weights
            pl.BlockSpec((C2, 1), lambda n: (0, 0)),         # resident bias
        ],
        out_specs=pl.BlockSpec((1, C_out, HW4), lambda n: (n, 0, 0)),
        compiler_params=pltpu.CompilerParams(
            dimension_semantics=("parallel",)),
    )(xz_flat, w_mat, b_mat)

    # Metadata-only reshape: (C_out, 4*H*W) row-major == (C_out, 2H, 2W).
    return out_flat.reshape(N, C_out, 2 * H, 2 * W)


def _reference(x, w_t, bias, *, kernel_size, stride=2, neg_slope=0.01):
    # Independent XLA reference for PyTorch ConvTranspose2d + LeakyReLU semantics.
    K = kernel_size
    p = K // 2 - 1
    pad = K - 1 - p
    w_conv = jnp.flip(jnp.transpose(w_t, (1, 0, 2, 3)), axis=(2, 3))
    y = lax.conv_general_dilated(
        x, w_conv, window_strides=(1, 1),
        padding=[(pad, pad), (pad, pad)],
        lhs_dilation=(stride, stride),
        dimension_numbers=("NCHW", "OIHW", "NCHW"))
    y = y + bias[None, :, None, None]
    return jnp.where(y >= 0, y, neg_slope * y)


if __name__ == "__main__":
    key = jax.random.PRNGKey(0)
    k1, k2, k3 = jax.random.split(key, 3)

    N, C_in, H, W = 2, 4, 16, 16
    C_out, K = 8, 4      # kernel_size=4 -> padding=1, output spatial = 2x input

    x = jax.random.normal(k1, (N, C_in, H, W), jnp.float32)
    # PyTorch ConvTranspose2d weight shape: (in_channels, out_channels, kH, kW)
    w_t = jax.random.normal(k2, (C_in, C_out, K, K), jnp.float32) * 0.1
    bias = jax.random.normal(k3, (C_out,), jnp.float32) * 0.1

    fwd = jax.jit(functools.partial(cnn_doubler_forward, kernel_size=K))
    out = jax.block_until_ready(fwd(x, w_t, bias))

    ref = _reference(x, w_t, bias, kernel_size=K)
    assert out.shape == (N, C_out, 2 * H, 2 * W), out.shape
    err = float(jnp.max(jnp.abs(out - ref)))
    assert jnp.allclose(out, ref, atol=1e-4, rtol=1e-4), err
    print("KERNEL_OK")
</pallas_src>

<mosaic_0001>
module attributes {stable_mosaic.version = 11 : i64} {
  func.func @_doubler_kernel(%arg0: i32, %arg1: memref<1x4x684xf32, #tpu.memory_space<vmem>>, %arg2: memref<16x48xf32, #tpu.memory_space<vmem>>, %arg3: memref<16x1xf32, #tpu.memory_space<vmem>>, %arg4: memref<1x8x1024xf32, #tpu.memory_space<vmem>>) attributes {dimension_semantics = [#tpu.dimension_semantics<parallel>], iteration_bounds = array<i64: 2>, scalar_prefetch = 0 : i64, scratch_operands = 0 : i64, tpu.core_type = #tpu.core_type<tc>, window_params = [{transform_indices = @transform_0, window_bounds = array<i64: 1, 4, 684>}, {pipeline_mode = #tpu.pipeline_mode<synchronous>, transform_indices = @transform_1, window_bounds = array<i64: 16, 48>}, {pipeline_mode = #tpu.pipeline_mode<synchronous>, transform_indices = @transform_2, window_bounds = array<i64: 16, 1>}, {transform_indices = @transform_3, window_bounds = array<i64: 1, 8, 1024>}]} {
    %c0 = arith.constant 0 : index
    %c0_0 = arith.constant 0 : index
    %0 = vector.load %arg3[%c0, %c0_0] : memref<16x1xf32, #tpu.memory_space<vmem>>, vector<16x1xf32>
    %1 = vector.shape_cast %0 : vector<16x1xf32> to vector<16x1xf32>
    %2 = vector.broadcast %1 : vector<16x1xf32> to vector<16x576xf32>
    %c0_1 = arith.constant 0 : index
    %c0_2 = arith.constant 0 : index
    %c0_3 = arith.constant 0 : index
    %3 = vector.load %arg1[%c0_1, %c0_2, %c0_3] : memref<1x4x684xf32, #tpu.memory_space<vmem>>, vector<1x4x576xf32>
    %4 = vector.shape_cast %3 : vector<1x4x576xf32> to vector<4x576xf32>
    %c0_4 = arith.constant 0 : index
    %c0_5 = arith.constant 0 : index
    %5 = vector.load %arg2[%c0_4, %c0_5] : memref<16x48xf32, #tpu.memory_space<vmem>>, vector<16x4xf32>
    %cst = arith.constant dense<0.000000e+00> : vector<16x576xf32>
    %6 = tpu.matmul %5, %4, %cst {dimension_numbers = #tpu.dot_dimension_numbers<[1], [0], [0], [1], [0, 0, 1, 1], [], []>} : vector<16x4xf32>, vector<4x576xf32>, vector<16x576xf32> -> vector<16x576xf32>
    %7 = arith.addf %2, %6 : vector<16x576xf32>
    %c0_6 = arith.constant 0 : index
    %c0_7 = arith.constant 0 : index
    %c1 = arith.constant 1 : index
    %8 = vector.load %arg1[%c0_6, %c0_7, %c1] : memref<1x4x684xf32, #tpu.memory_space<vmem>>, vector<1x4x576xf32>
    %9 = vector.shape_cast %8 : vector<1x4x576xf32> to vector<4x576xf32>
    %c0_8 = arith.constant 0 : index
    %c4 = arith.constant 4 : index
    %10 = vector.load %arg2[%c0_8, %c4] : memref<16x48xf32, #tpu.memory_space<vmem>>, vector<16x4xf32>
    %cst_9 = arith.constant dense<0.000000e+00> : vector<16x576xf32>
    %11 = tpu.matmul %10, %9, %cst_9 {dimension_numbers = #tpu.dot_dimension_numbers<[1], [0], [0], [1], [0, 0, 1, 1], [], []>} : vector<16x4xf32>, vector<4x576xf32>, vector<16x576xf32> -> vector<16x576xf32>
    %12 = arith.addf %7, %11 : vector<16x576xf32>
    %c0_10 = arith.constant 0 : index
    %c0_11 = arith.constant 0 : index
    %c2 = arith.constant 2 : index
    %13 = vector.load %arg1[%c0_10, %c0_11, %c2] : memref<1x4x684xf32, #tpu.memory_space<vmem>>, vector<1x4x576xf32>
    %14 = vector.shape_cast %13 : vector<1x4x576xf32> to vector<4x576xf32>
    %c0_12 = arith.constant 0 : index
    %c8 = arith.constant 8 : index
    %15 = vector.load %arg2[%c0_12, %c8] : memref<16x48xf32, #tpu.memory_space<vmem>>, vector<16x4xf32>
    %cst_13 = arith.constant dense<0.000000e+00> : vector<16x576xf32>
    %16 = tpu.matmul %15, %14, %cst_13 {dimension_numbers = #tpu.dot_dimension_numbers<[1], [0], [0], [1], [0, 0, 1, 1], [], []>} : vector<16x4xf32>, vector<4x576xf32>, vector<16x576xf32> -> vector<16x576xf32>
    %17 = arith.addf %12, %16 : vector<16x576xf32>
    %c0_14 = arith.constant 0 : index
    %c0_15 = arith.constant 0 : index
    %c3 = arith.constant 3 : index
    %18 = vector.load %arg1[%c0_14, %c0_15, %c3] : memref<1x4x684xf32, #tpu.memory_space<vmem>>, vector<1x4x576xf32>
    %19 = vector.shape_cast %18 : vector<1x4x576xf32> to vector<4x576xf32>
    %c0_16 = arith.constant 0 : index
    %c12 = arith.constant 12 : index
    %20 = vector.load %arg2[%c0_16, %c12] : memref<16x48xf32, #tpu.memory_space<vmem>>, vector<16x4xf32>
    %cst_17 = arith.constant dense<0.000000e+00> : vector<16x576xf32>
    %21 = tpu.matmul %20, %19, %cst_17 {dimension_numbers = #tpu.dot_dimension_numbers<[1], [0], [0], [1], [0, 0, 1, 1], [], []>} : vector<16x4xf32>, vector<4x576xf32>, vector<16x576xf32> -> vector<16x576xf32>
    %22 = arith.addf %17, %21 : vector<16x576xf32>
    %c0_18 = arith.constant 0 : index
    %c0_19 = arith.constant 0 : index
    %c36 = arith.constant 36 : index
    %23 = vector.load %arg1[%c0_18, %c0_19, %c36] : memref<1x4x684xf32, #tpu.memory_space<vmem>>, vector<1x4x576xf32>
    %24 = vector.shape_cast %23 : vector<1x4x576xf32> to vector<4x576xf32>
    %c0_20 = arith.constant 0 : index
    %c16 = arith.constant 16 : index
    %25 = vector.load %arg2[%c0_20, %c16] : memref<16x48xf32, #tpu.memory_space<vmem>>, vector<16x4xf32>
    %cst_21 = arith.constant dense<0.000000e+00> : vector<16x576xf32>
    %26 = tpu.matmul %25, %24, %cst_21 {dimension_numbers = #tpu.dot_dimension_numbers<[1], [0], [0], [1], [0, 0, 1, 1], [], []>} : vector<16x4xf32>, vector<4x576xf32>, vector<16x576xf32> -> vector<16x576xf32>
    %27 = arith.addf %22, %26 : vector<16x576xf32>
    %c0_22 = arith.constant 0 : index
    %c0_23 = arith.constant 0 : index
    %c37 = arith.constant 37 : index
    %28 = vector.load %arg1[%c0_22, %c0_23, %c37] : memref<1x4x684xf32, #tpu.memory_space<vmem>>, vector<1x4x576xf32>
    %29 = vector.shape_cast %28 : vector<1x4x576xf32> to vector<4x576xf32>
    %c0_24 = arith.constant 0 : index
    %c20 = arith.constant 20 : index
    %30 = vector.load %arg2[%c0_24, %c20] : memref<16x48xf32, #tpu.memory_space<vmem>>, vector<16x4xf32>
    %cst_25 = arith.constant dense<0.000000e+00> : vector<16x576xf32>
    %31 = tpu.matmul %30, %29, %cst_25 {dimension_numbers = #tpu.dot_dimension_numbers<[1], [0], [0], [1], [0, 0, 1, 1], [], []>} : vector<16x4xf32>, vector<4x576xf32>, vector<16x576xf32> -> vector<16x576xf32>
    %32 = arith.addf %27, %31 : vector<16x576xf32>
    %c0_26 = arith.constant 0 : index
    %c0_27 = arith.constant 0 : index
    %c38 = arith.constant 38 : index
    %33 = vector.load %arg1[%c0_26, %c0_27, %c38] : memref<1x4x684xf32, #tpu.memory_space<vmem>>, vector<1x4x576xf32>
    %34 = vector.shape_cast %33 : vector<1x4x576xf32> to vector<4x576xf32>
    %c0_28 = arith.constant 0 : index
    %c24 = arith.constant 24 : index
    %35 = vector.load %arg2[%c0_28, %c24] : memref<16x48xf32, #tpu.memory_space<vmem>>, vector<16x4xf32>
    %cst_29 = arith.constant dense<0.000000e+00> : vector<16x576xf32>
    %36 = tpu.matmul %35, %34, %cst_29 {dimension_numbers = #tpu.dot_dimension_numbers<[1], [0], [0], [1], [0, 0, 1, 1], [], []>} : vector<16x4xf32>, vector<4x576xf32>, vector<16x576xf32> -> vector<16x576xf32>
    %37 = arith.addf %32, %36 : vector<16x576xf32>
    %c0_30 = arith.constant 0 : index
    %c0_31 = arith.constant 0 : index
    %c39 = arith.constant 39 : index
    %38 = vector.load %arg1[%c0_30, %c0_31, %c39] : memref<1x4x684xf32, #tpu.memory_space<vmem>>, vector<1x4x576xf32>
    %39 = vector.shape_cast %38 : vector<1x4x576xf32> to vector<4x576xf32>
    %c0_32 = arith.constant 0 : index
    %c28 = arith.constant 28 : index
    %40 = vector.load %arg2[%c0_32, %c28] : memref<16x48xf32, #tpu.memory_space<vmem>>, vector<16x4xf32>
    %cst_33 = arith.constant dense<0.000000e+00> : vector<16x576xf32>
    %41 = tpu.matmul %40, %39, %cst_33 {dimension_numbers = #tpu.dot_dimension_numbers<[1], [0], [0], [1], [0, 0, 1, 1], [], []>} : vector<16x4xf32>, vector<4x576xf32>, vector<16x576xf32> -> vector<16x576xf32>
    %42 = arith.addf %37, %41 : vector<16x576xf32>
    %c0_34 = arith.constant 0 : index
    %c0_35 = arith.constant 0 : index
    %c72 = arith.constant 72 : index
    %43 = vector.load %arg1[%c0_34, %c0_35, %c72] : memref<1x4x684xf32, #tpu.memory_space<vmem>>, vector<1x4x576xf32>
    %44 = vector.shape_cast %43 : vector<1x4x576xf32> to vector<4x576xf32>
    %c0_36 = arith.constant 0 : index
    %c32 = arith.constant 32 : index
    %45 = vector.load %arg2[%c0_36, %c32] : memref<16x48xf32, #tpu.memory_space<vmem>>, vector<16x4xf32>
    %cst_37 = arith.constant dense<0.000000e+00> : vector<16x576xf32>
    %46 = tpu.matmul %45, %44, %cst_37 {dimension_numbers = #tpu.dot_dimension_numbers<[1], [0], [0], [1], [0, 0, 1, 1], [], []>} : vector<16x4xf32>, vector<4x576xf32>, vector<16x576xf32> -> vector<16x576xf32>
    %47 = arith.addf %42, %46 : vector<16x576xf32>
    %c0_38 = arith.constant 0 : index
    %c0_39 = arith.constant 0 : index
    %c73 = arith.constant 73 : index
    %48 = vector.load %arg1[%c0_38, %c0_39, %c73] : memref<1x4x684xf32, #tpu.memory_space<vmem>>, vector<1x4x576xf32>
    %49 = vector.shape_cast %48 : vector<1x4x576xf32> to vector<4x576xf32>
    %c0_40 = arith.constant 0 : index
    %c36_41 = arith.constant 36 : index
    %50 = vector.load %arg2[%c0_40, %c36_41] : memref<16x48xf32, #tpu.memory_space<vmem>>, vector<16x4xf32>
    %cst_42 = arith.constant dense<0.000000e+00> : vector<16x576xf32>
    %51 = tpu.matmul %50, %49, %cst_42 {dimension_numbers = #tpu.dot_dimension_numbers<[1], [0], [0], [1], [0, 0, 1, 1], [], []>} : vector<16x4xf32>, vector<4x576xf32>, vector<16x576xf32> -> vector<16x576xf32>
    %52 = arith.addf %47, %51 : vector<16x576xf32>
    %c0_43 = arith.constant 0 : index
    %c0_44 = arith.constant 0 : index
    %c74 = arith.constant 74 : index
    %53 = vector.load %arg1[%c0_43, %c0_44, %c74] : memref<1x4x684xf32, #tpu.memory_space<vmem>>, vector<1x4x576xf32>
    %54 = vector.shape_cast %53 : vector<1x4x576xf32> to vector<4x576xf32>
    %c0_45 = arith.constant 0 : index
    %c40 = arith.constant 40 : index
    %55 = vector.load %arg2[%c0_45, %c40] : memref<16x48xf32, #tpu.memory_space<vmem>>, vector<16x4xf32>
    %cst_46 = arith.constant dense<0.000000e+00> : vector<16x576xf32>
    %56 = tpu.matmul %55, %54, %cst_46 {dimension_numbers = #tpu.dot_dimension_numbers<[1], [0], [0], [1], [0, 0, 1, 1], [], []>} : vector<16x4xf32>, vector<4x576xf32>, vector<16x576xf32> -> vector<16x576xf32>
    %57 = arith.addf %52, %56 : vector<16x576xf32>
    %c0_47 = arith.constant 0 : index
    %c0_48 = arith.constant 0 : index
    %c75 = arith.constant 75 : index
    %58 = vector.load %arg1[%c0_47, %c0_48, %c75] : memref<1x4x684xf32, #tpu.memory_space<vmem>>, vector<1x4x576xf32>
    %59 = vector.shape_cast %58 : vector<1x4x576xf32> to vector<4x576xf32>
    %c0_49 = arith.constant 0 : index
    %c44 = arith.constant 44 : index
    %60 = vector.load %arg2[%c0_49, %c44] : memref<16x48xf32, #tpu.memory_space<vmem>>, vector<16x4xf32>
    %cst_50 = arith.constant dense<0.000000e+00> : vector<16x576xf32>
    %61 = tpu.matmul %60, %59, %cst_50 {dimension_numbers = #tpu.dot_dimension_numbers<[1], [0], [0], [1], [0, 0, 1, 1], [], []>} : vector<16x4xf32>, vector<4x576xf32>, vector<16x576xf32> -> vector<16x576xf32>
    %62 = arith.addf %57, %61 : vector<16x576xf32>
    %cst_51 = arith.constant 0.000000e+00 : f32
    %63 = vector.broadcast %cst_51 : f32 to vector<16x576xf32>
    %64 = arith.cmpf oge, %62, %63 : vector<16x576xf32>
    %cst_52 = arith.constant 0.00999999977 : f32
    %65 = vector.broadcast %cst_52 : f32 to vector<16x576xf32>
    %66 = arith.mulf %65, %62 : vector<16x576xf32>
    %67 = arith.select %64, %62, %66 : vector<16x576xi1>, vector<16x576xf32>
    %68 = vector.extract_strided_slice %67 {offsets = [0, 0], sizes = [16, 32], strides = [1, 1]} : vector<16x576xf32> to vector<16x32xf32>
    %69 = vector.extract_strided_slice %68 {offsets = [0, 0], sizes = [8, 32], strides = [1, 1]} : vector<16x32xf32> to vector<8x32xf32>
    %c0_53 = arith.constant 0 : index
    %c0_54 = arith.constant 0 : index
    %c0_55 = arith.constant 0 : index
    %70 = vector.load %arg4[%c0_53, %c0_54, %c0_55] : memref<1x8x1024xf32, #tpu.memory_space<vmem>>, vector<1x8x32xf32>
    %71 = vector.shape_cast %70 : vector<1x8x32xf32> to vector<8x32xf32>
    %72 = vector.shape_cast %69 : vector<8x32xf32> to vector<1x8x32xf32>
    tpu.vector_store %arg4[%c0_53, %c0_54, %c0_55], %72 {strides = array<i32>} : memref<1x8x1024xf32, #tpu.memory_space<vmem>>, vector<1x8x32xf32>,
    %73 = vector.extract_strided_slice %68 {offsets = [8, 0], sizes = [8, 32], strides = [1, 1]} : vector<16x32xf32> to vector<8x32xf32>
    %c0_56 = arith.constant 0 : index
    %c0_57 = arith.constant 0 : index
    %c32_58 = arith.constant 32 : index
    %74 = vector.load %arg4[%c0_56, %c0_57, %c32_58] : memref<1x8x1024xf32, #tpu.memory_space<vmem>>, vector<1x8x32xf32>
    %75 = vector.shape_cast %74 : vector<1x8x32xf32> to vector<8x32xf32>
    %76 = vector.shape_cast %73 : vector<8x32xf32> to vector<1x8x32xf32>
    tpu.vector_store %arg4[%c0_56, %c0_57, %c32_58], %76 {strides = array<i32>} : memref<1x8x1024xf32, #tpu.memory_space<vmem>>, vector<1x8x32xf32>,
    %77 = vector.extract_strided_slice %67 {offsets = [0, 36], sizes = [16, 32], strides = [1, 1]} : vector<16x576xf32> to vector<16x32xf32>
    %78 = vector.extract_strided_slice %77 {offsets = [0, 0], sizes = [8, 32], strides = [1, 1]} : vector<16x32xf32> to vector<8x32xf32>
    %c0_59 = arith.constant 0 : index
    %c0_60 = arith.constant 0 : index
    %c64 = arith.constant 64 : index
    %79 = vector.load %arg4[%c0_59, %c0_60, %c64] : memref<1x8x1024xf32, #tpu.memory_space<vmem>>, vector<1x8x32xf32>
    %80 = vector.shape_cast %79 : vector<1x8x32xf32> to vector<8x32xf32>
    %81 = vector.shape_cast %78 : vector<8x32xf32> to vector<1x8x32xf32>
    tpu.vector_store %arg4[%c0_59, %c0_60, %c64], %81 {strides = array<i32>} : memref<1x8x1024xf32, #tpu.memory_space<vmem>>, vector<1x8x32xf32>,
    %82 = vector.extract_strided_slice %77 {offsets = [8, 0], sizes = [8, 32], strides = [1, 1]} : vector<16x32xf32> to vector<8x32xf32>
    %c0_61 = arith.constant 0 : index
    %c0_62 = arith.constant 0 : index
    %c96 = arith.constant 96 : index
    %83 = vector.load %arg4[%c0_61, %c0_62, %c96] : memref<1x8x1024xf32, #tpu.memory_space<vmem>>, vector<1x8x32xf32>
    %84 = vector.shape_cast %83 : vector<1x8x32xf32> to vector<8x32xf32>
    %85 = vector.shape_cast %82 : vector<8x32xf32> to vector<1x8x32xf32>
    tpu.vector_store %arg4[%c0_61, %c0_62, %c96], %85 {strides = array<i32>} : memref<1x8x1024xf32, #tpu.memory_space<vmem>>, vector<1x8x32xf32>,
    %86 = vector.extract_strided_slice %67 {offsets = [0, 72], sizes = [16, 32], strides = [1, 1]} : vector<16x576xf32> to vector<16x32xf32>
    %87 = vector.extract_strided_slice %86 {offsets = [0, 0], sizes = [8, 32], strides = [1, 1]} : vector<16x32xf32> to vector<8x32xf32>
    %c0_63 = arith.constant 0 : index
    %c0_64 = arith.constant 0 : index
    %c128 = arith.constant 128 : index
    %88 = vector.load %arg4[%c0_63, %c0_64, %c128] : memref<1x8x1024xf32, #tpu.memory_space<vmem>>, vector<1x8x32xf32>
    %89 = vector.shape_cast %88 : vector<1x8x32xf32> to vector<8x32xf32>
    %90 = vector.shape_cast %87 : vector<8x32xf32> to vector<1x8x32xf32>
    tpu.vector_store %arg4[%c0_63, %c0_64, %c128], %90 {strides = array<i32>} : memref<1x8x1024xf32, #tpu.memory_space<vmem>>, vector<1x8x32xf32>,
    %91 = vector.extract_strided_slice %86 {offsets = [8, 0], sizes = [8, 32], strides = [1, 1]} : vector<16x32xf32> to vector<8x32xf32>
    %c0_65 = arith.constant 0 : index
    %c0_66 = arith.constant 0 : index
    %c160 = arith.constant 160 : index
    %92 = vector.load %arg4[%c0_65, %c0_66, %c160] : memref<1x8x1024xf32, #tpu.memory_space<vmem>>, vector<1x8x32xf32>
    %93 = vector.shape_cast %92 : vector<1x8x32xf32> to vector<8x32xf32>
    %94 = vector.shape_cast %91 : vector<8x32xf32> to vector<1x8x32xf32>
    tpu.vector_store %arg4[%c0_65, %c0_66, %c160], %94 {strides = array<i32>} : memref<1x8x1024xf32, #tpu.memory_space<vmem>>, vector<1x8x32xf32>,
    %95 = vector.extract_strided_slice %67 {offsets = [0, 108], sizes = [16, 32], strides = [1, 1]} : vector<16x576xf32> to vector<16x32xf32>
    %96 = vector.extract_strided_slice %95 {offsets = [0, 0], sizes = [8, 32], strides = [1, 1]} : vector<16x32xf32> to vector<8x32xf32>
    %c0_67 = arith.constant 0 : index
    %c0_68 = arith.constant 0 : index
    %c192 = arith.constant 192 : index
    %97 = vector.load %arg4[%c0_67, %c0_68, %c192] : memref<1x8x1024xf32, #tpu.memory_space<vmem>>, vector<1x8x32xf32>
    %98 = vector.shape_cast %97 : vector<1x8x32xf32> to vector<8x32xf32>
    %99 = vector.shape_cast %96 : vector<8x32xf32> to vector<1x8x32xf32>
    tpu.vector_store %arg4[%c0_67, %c0_68, %c192], %99 {strides = array<i32>} : memref<1x8x1024xf32, #tpu.memory_space<vmem>>, vector<1x8x32xf32>,
    %100 = vector.extract_strided_slice %95 {offsets = [8, 0], sizes = [8, 32], strides = [1, 1]} : vector<16x32xf32> to vector<8x32xf32>
    %c0_69 = arith.constant 0 : index
    %c0_70 = arith.constant 0 : index
    %c224 = arith.constant 224 : index
    %101 = vector.load %arg4[%c0_69, %c0_70, %c224] : memref<1x8x1024xf32, #tpu.memory_space<vmem>>, vector<1x8x32xf32>
    %102 = vector.shape_cast %101 : vector<1x8x32xf32> to vector<8x32xf32>
    %103 = vector.shape_cast %100 : vector<8x32xf32> to vector<1x8x32xf32>
    tpu.vector_store %arg4[%c0_69, %c0_70, %c224], %103 {strides = array<i32>} : memref<1x8x1024xf32, #tpu.memory_space<vmem>>, vector<1x8x32xf32>,
    %104 = vector.extract_strided_slice %67 {offsets = [0, 144], sizes = [16, 32], strides = [1, 1]} : vector<16x576xf32> to vector<16x32xf32>
    %105 = vector.extract_strided_slice %104 {offsets = [0, 0], sizes = [8, 32], strides = [1, 1]} : vector<16x32xf32> to vector<8x32xf32>
    %c0_71 = arith.constant 0 : index
    %c0_72 = arith.constant 0 : index
    %c256 = arith.constant 256 : index
    %106 = vector.load %arg4[%c0_71, %c0_72, %c256] : memref<1x8x1024xf32, #tpu.memory_space<vmem>>, vector<1x8x32xf32>
    %107 = vector.shape_cast %106 : vector<1x8x32xf32> to vector<8x32xf32>
    %108 = vector.shape_cast %105 : vector<8x32xf32> to vector<1x8x32xf32>
    tpu.vector_store %arg4[%c0_71, %c0_72, %c256], %108 {strides = array<i32>} : memref<1x8x1024xf32, #tpu.memory_space<vmem>>, vector<1x8x32xf32>,
    %109 = vector.extract_strided_slice %104 {offsets = [8, 0], sizes = [8, 32], strides = [1, 1]} : vector<16x32xf32> to vector<8x32xf32>
    %c0_73 = arith.constant 0 : index
    %c0_74 = arith.constant 0 : index
    %c288 = arith.constant 288 : index
    %110 = vector.load %arg4[%c0_73, %c0_74, %c288] : memref<1x8x1024xf32, #tpu.memory_space<vmem>>, vector<1x8x32xf32>
    %111 = vector.shape_cast %110 : vector<1x8x32xf32> to vector<8x32xf32>
    %112 = vector.shape_cast %109 : vector<8x32xf32> to vector<1x8x32xf32>
    tpu.vector_store %arg4[%c0_73, %c0_74, %c288], %112 {strides = array<i32>} : memref<1x8x1024xf32, #tpu.memory_space<vmem>>, vector<1x8x32xf32>,
    %113 = vector.extract_strided_slice %67 {offsets = [0, 180], sizes = [16, 32], strides = [1, 1]} : vector<16x576xf32> to vector<16x32xf32>
    %114 = vector.extract_strided_slice %113 {offsets = [0, 0], sizes = [8, 32], strides = [1, 1]} : vector<16x32xf32> to vector<8x32xf32>
    %c0_75 = arith.constant 0 : index
    %c0_76 = arith.constant 0 : index
    %c320 = arith.constant 320 : index
    %115 = vector.load %arg4[%c0_75, %c0_76, %c320] : memref<1x8x1024xf32, #tpu.memory_space<vmem>>, vector<1x8x32xf32>
    %116 = vector.shape_cast %115 : vector<1x8x32xf32> to vector<8x32xf32>
    %117 = vector.shape_cast %114 : vector<8x32xf32> to vector<1x8x32xf32>
    tpu.vector_store %arg4[%c0_75, %c0_76, %c320], %117 {strides = array<i32>} : memref<1x8x1024xf32, #tpu.memory_space<vmem>>, vector<1x8x32xf32>,
    %118 = vector.extract_strided_slice %113 {offsets = [8, 0], sizes = [8, 32], strides = [1, 1]} : vector<16x32xf32> to vector<8x32xf32>
    %c0_77 = arith.constant 0 : index
    %c0_78 = arith.constant 0 : index
    %c352 = arith.constant 352 : index
    %119 = vector.load %arg4[%c0_77, %c0_78, %c352] : memref<1x8x1024xf32, #tpu.memory_space<vmem>>, vector<1x8x32xf32>
    %120 = vector.shape_cast %119 : vector<1x8x32xf32> to vector<8x32xf32>
    %121 = vector.shape_cast %118 : vector<8x32xf32> to vector<1x8x32xf32>
    tpu.vector_store %arg4[%c0_77, %c0_78, %c352], %121 {strides = array<i32>} : memref<1x8x1024xf32, #tpu.memory_space<vmem>>, vector<1x8x32xf32>,
    %122 = vector.extract_strided_slice %67 {offsets = [0, 216], sizes = [16, 32], strides = [1, 1]} : vector<16x576xf32> to vector<16x32xf32>
    %123 = vector.extract_strided_slice %122 {offsets = [0, 0], sizes = [8, 32], strides = [1, 1]} : vector<16x32xf32> to vector<8x32xf32>
    %c0_79 = arith.constant 0 : index
    %c0_80 = arith.constant 0 : index
    %c384 = arith.constant 384 : index
    %124 = vector.load %arg4[%c0_79, %c0_80, %c384] : memref<1x8x1024xf32, #tpu.memory_space<vmem>>, vector<1x8x32xf32>
    %125 = vector.shape_cast %124 : vector<1x8x32xf32> to vector<8x32xf32>
    %126 = vector.shape_cast %123 : vector<8x32xf32> to vector<1x8x32xf32>
    tpu.vector_store %arg4[%c0_79, %c0_80, %c384], %126 {strides = array<i32>} : memref<1x8x1024xf32, #tpu.memory_space<vmem>>, vector<1x8x32xf32>,
    %127 = vector.extract_strided_slice %122 {offsets = [8, 0], sizes = [8, 32], strides = [1, 1]} : vector<16x32xf32> to vector<8x32xf32>
    %c0_81 = arith.constant 0 : index
    %c0_82 = arith.constant 0 : index
    %c416 = arith.constant 416 : index
    %128 = vector.load %arg4[%c0_81, %c0_82, %c416] : memref<1x8x1024xf32, #tpu.memory_space<vmem>>, vector<1x8x32xf32>
    %129 = vector.shape_cast %128 : vector<1x8x32xf32> to vector<8x32xf32>
    %130 = vector.shape_cast %127 : vector<8x32xf32> to vector<1x8x32xf32>
    tpu.vector_store %arg4[%c0_81, %c0_82, %c416], %130 {strides = array<i32>} : memref<1x8x1024xf32, #tpu.memory_space<vmem>>, vector<1x8x32xf32>,
    %131 = vector.extract_strided_slice %67 {offsets = [0, 252], sizes = [16, 32], strides = [1, 1]} : vector<16x576xf32> to vector<16x32xf32>
    %132 = vector.extract_strided_slice %131 {offsets = [0, 0], sizes = [8, 32], strides = [1, 1]} : vector<16x32xf32> to vector<8x32xf32>
    %c0_83 = arith.constant 0 : index
    %c0_84 = arith.constant 0 : index
    %c448 = arith.constant 448 : index
    %133 = vector.load %arg4[%c0_83, %c0_84, %c448] : memref<1x8x1024xf32, #tpu.memory_space<vmem>>, vector<1x8x32xf32>
    %134 = vector.shape_cast %133 : vector<1x8x32xf32> to vector<8x32xf32>
    %135 = vector.shape_cast %132 : vector<8x32xf32> to vector<1x8x32xf32>
    tpu.vector_store %arg4[%c0_83, %c0_84, %c448], %135 {strides = array<i32>} : memref<1x8x1024xf32, #tpu.memory_space<vmem>>, vector<1x8x32xf32>,
    %136 = vector.extract_strided_slice %131 {offsets = [8, 0], sizes = [8, 32], strides = [1, 1]} : vector<16x32xf32> to vector<8x32xf32>
    %c0_85 = arith.constant 0 : index
    %c0_86 = arith.constant 0 : index
    %c480 = arith.constant 480 : index
    %137 = vector.load %arg4[%c0_85, %c0_86, %c480] : memref<1x8x1024xf32, #tpu.memory_space<vmem>>, vector<1x8x32xf32>
    %138 = vector.shape_cast %137 : vector<1x8x32xf32> to vector<8x32xf32>
    %139 = vector.shape_cast %136 : vector<8x32xf32> to vector<1x8x32xf32>
    tpu.vector_store %arg4[%c0_85, %c0_86, %c480], %139 {strides = array<i32>} : memref<1x8x1024xf32, #tpu.memory_space<vmem>>, vector<1x8x32xf32>,
    %140 = vector.extract_strided_slice %67 {offsets = [0, 288], sizes = [16, 32], strides = [1, 1]} : vector<16x576xf32> to vector<16x32xf32>
    %141 = vector.extract_strided_slice %140 {offsets = [0, 0], sizes = [8, 32], strides = [1, 1]} : vector<16x32xf32> to vector<8x32xf32>
    %c0_87 = arith.constant 0 : index
    %c0_88 = arith.constant 0 : index
    %c512 = arith.constant 512 : index
    %142 = vector.load %arg4[%c0_87, %c0_88, %c512] : memref<1x8x1024xf32, #tpu.memory_space<vmem>>, vector<1x8x32xf32>
    %143 = vector.shape_cast %142 : vector<1x8x32xf32> to vector<8x32xf32>
    %144 = vector.shape_cast %141 : vector<8x32xf32> to vector<1x8x32xf32>
    tpu.vector_store %arg4[%c0_87, %c0_88, %c512], %144 {strides = array<i32>} : memref<1x8x1024xf32, #tpu.memory_space<vmem>>, vector<1x8x32xf32>,
    %145 = vector.extract_strided_slice %140 {offsets = [8, 0], sizes = [8, 32], strides = [1, 1]} : vector<16x32xf32> to vector<8x32xf32>
    %c0_89 = arith.constant 0 : index
    %c0_90 = arith.constant 0 : index
    %c544 = arith.constant 544 : index
    %146 = vector.load %arg4[%c0_89, %c0_90, %c544] : memref<1x8x1024xf32, #tpu.memory_space<vmem>>, vector<1x8x32xf32>
    %147 = vector.shape_cast %146 : vector<1x8x32xf32> to vector<8x32xf32>
    %148 = vector.shape_cast %145 : vector<8x32xf32> to vector<1x8x32xf32>
    tpu.vector_store %arg4[%c0_89, %c0_90, %c544], %148 {strides = array<i32>} : memref<1x8x1024xf32, #tpu.memory_space<vmem>>, vector<1x8x32xf32>,
    %149 = vector.extract_strided_slice %67 {offsets = [0, 324], sizes = [16, 32], strides = [1, 1]} : vector<16x576xf32> to vector<16x32xf32>
    %150 = vector.extract_strided_slice %149 {offsets = [0, 0], sizes = [8, 32], strides = [1, 1]} : vector<16x32xf32> to vector<8x32xf32>
    %c0_91 = arith.constant 0 : index
    %c0_92 = arith.constant 0 : index
    %c576 = arith.constant 576 : index
    %151 = vector.load %arg4[%c0_91, %c0_92, %c576] : memref<1x8x1024xf32, #tpu.memory_space<vmem>>, vector<1x8x32xf32>
    %152 = vector.shape_cast %151 : vector<1x8x32xf32> to vector<8x32xf32>
    %153 = vector.shape_cast %150 : vector<8x32xf32> to vector<1x8x32xf32>
    tpu.vector_store %arg4[%c0_91, %c0_92, %c576], %153 {strides = array<i32>} : memref<1x8x1024xf32, #tpu.memory_space<vmem>>, vector<1x8x32xf32>,
    %154 = vector.extract_strided_slice %149 {offsets = [8, 0], sizes = [8, 32], strides = [1, 1]} : vector<16x32xf32> to vector<8x32xf32>
    %c0_93 = arith.constant 0 : index
    %c0_94 = arith.constant 0 : index
    %c608 = arith.constant 608 : index
    %155 = vector.load %arg4[%c0_93, %c0_94, %c608] : memref<1x8x1024xf32, #tpu.memory_space<vmem>>, vector<1x8x32xf32>
    %156 = vector.shape_cast %155 : vector<1x8x32xf32> to vector<8x32xf32>
    %157 = vector.shape_cast %154 : vector<8x32xf32> to vector<1x8x32xf32>
    tpu.vector_store %arg4[%c0_93, %c0_94, %c608], %157 {strides = array<i32>} : memref<1x8x1024xf32, #tpu.memory_space<vmem>>, vector<1x8x32xf32>,
    %158 = vector.extract_strided_slice %67 {offsets = [0, 360], sizes = [16, 32], strides = [1, 1]} : vector<16x576xf32> to vector<16x32xf32>
    %159 = vector.extract_strided_slice %158 {offsets = [0, 0], sizes = [8, 32], strides = [1, 1]} : vector<16x32xf32> to vector<8x32xf32>
    %c0_95 = arith.constant 0 : index
    %c0_96 = arith.constant 0 : index
    %c640 = arith.constant 640 : index
    %160 = vector.load %arg4[%c0_95, %c0_96, %c640] : memref<1x8x1024xf32, #tpu.memory_space<vmem>>, vector<1x8x32xf32>
    %161 = vector.shape_cast %160 : vector<1x8x32xf32> to vector<8x32xf32>
    %162 = vector.shape_cast %159 : vector<8x32xf32> to vector<1x8x32xf32>
    tpu.vector_store %arg4[%c0_95, %c0_96, %c640], %162 {strides = array<i32>} : memref<1x8x1024xf32, #tpu.memory_space<vmem>>, vector<1x8x32xf32>,
    %163 = vector.extract_strided_slice %158 {offsets = [8, 0], sizes = [8, 32], strides = [1, 1]} : vector<16x32xf32> to vector<8x32xf32>
    %c0_97 = arith.constant 0 : index
    %c0_98 = arith.constant 0 : index
    %c672 = arith.constant 672 : index
    %164 = vector.load %arg4[%c0_97, %c0_98, %c672] : memref<1x8x1024xf32, #tpu.memory_space<vmem>>, vector<1x8x32xf32>
    %165 = vector.shape_cast %164 : vector<1x8x32xf32> to vector<8x32xf32>
    %166 = vector.shape_cast %163 : vector<8x32xf32> to vector<1x8x32xf32>
    tpu.vector_store %arg4[%c0_97, %c0_98, %c672], %166 {strides = array<i32>} : memref<1x8x1024xf32, #tpu.memory_space<vmem>>, vector<1x8x32xf32>,
    %167 = vector.extract_strided_slice %67 {offsets = [0, 396], sizes = [16, 32], strides = [1, 1]} : vector<16x576xf32> to vector<16x32xf32>
    %168 = vector.extract_strided_slice %167 {offsets = [0, 0], sizes = [8, 32], strides = [1, 1]} : vector<16x32xf32> to vector<8x32xf32>
    %c0_99 = arith.constant 0 : index
    %c0_100 = arith.constant 0 : index
    %c704 = arith.constant 704 : index
    %169 = vector.load %arg4[%c0_99, %c0_100, %c704] : memref<1x8x1024xf32, #tpu.memory_space<vmem>>, vector<1x8x32xf32>
    %170 = vector.shape_cast %169 : vector<1x8x32xf32> to vector<8x32xf32>
    %171 = vector.shape_cast %168 : vector<8x32xf32> to vector<1x8x32xf32>
    tpu.vector_store %arg4[%c0_99, %c0_100, %c704], %171 {strides = array<i32>} : memref<1x8x1024xf32, #tpu.memory_space<vmem>>, vector<1x8x32xf32>,
    %172 = vector.extract_strided_slice %167 {offsets = [8, 0], sizes = [8, 32], strides = [1, 1]} : vector<16x32xf32> to vector<8x32xf32>
    %c0_101 = arith.constant 0 : index
    %c0_102 = arith.constant 0 : index
    %c736 = arith.constant 736 : index
    %173 = vector.load %arg4[%c0_101, %c0_102, %c736] : memref<1x8x1024xf32, #tpu.memory_space<vmem>>, vector<1x8x32xf32>
    %174 = vector.shape_cast %173 : vector<1x8x32xf32> to vector<8x32xf32>
    %175 = vector.shape_cast %172 : vector<8x32xf32> to vector<1x8x32xf32>
    tpu.vector_store %arg4[%c0_101, %c0_102, %c736], %175 {strides = array<i32>} : memref<1x8x1024xf32, #tpu.memory_space<vmem>>, vector<1x8x32xf32>,
    %176 = vector.extract_strided_slice %67 {offsets = [0, 432], sizes = [16, 32], strides = [1, 1]} : vector<16x576xf32> to vector<16x32xf32>
    %177 = vector.extract_strided_slice %176 {offsets = [0, 0], sizes = [8, 32], strides = [1, 1]} : vector<16x32xf32> to vector<8x32xf32>
    %c0_103 = arith.constant 0 : index
    %c0_104 = arith.constant 0 : index
    %c768 = arith.constant 768 : index
    %178 = vector.load %arg4[%c0_103, %c0_104, %c768] : memref<1x8x1024xf32, #tpu.memory_space<vmem>>, vector<1x8x32xf32>
    %179 = vector.shape_cast %178 : vector<1x8x32xf32> to vector<8x32xf32>
    %180 = vector.shape_cast %177 : vector<8x32xf32> to vector<1x8x32xf32>
    tpu.vector_store %arg4[%c0_103, %c0_104, %c768], %180 {strides = array<i32>} : memref<1x8x1024xf32, #tpu.memory_space<vmem>>, vector<1x8x32xf32>,
    %181 = vector.extract_strided_slice %176 {offsets = [8, 0], sizes = [8, 32], strides = [1, 1]} : vector<16x32xf32> to vector<8x32xf32>
    %c0_105 = arith.constant 0 : index
    %c0_106 = arith.constant 0 : index
    %c800 = arith.constant 800 : index
    %182 = vector.load %arg4[%c0_105, %c0_106, %c800] : memref<1x8x1024xf32, #tpu.memory_space<vmem>>, vector<1x8x32xf32>
    %183 = vector.shape_cast %182 : vector<1x8x32xf32> to vector<8x32xf32>
    %184 = vector.shape_cast %181 : vector<8x32xf32> to vector<1x8x32xf32>
    tpu.vector_store %arg4[%c0_105, %c0_106, %c800], %184 {strides = array<i32>} : memref<1x8x1024xf32, #tpu.memory_space<vmem>>, vector<1x8x32xf32>,
    %185 = vector.extract_strided_slice %67 {offsets = [0, 468], sizes = [16, 32], strides = [1, 1]} : vector<16x576xf32> to vector<16x32xf32>
    %186 = vector.extract_strided_slice %185 {offsets = [0, 0], sizes = [8, 32], strides = [1, 1]} : vector<16x32xf32> to vector<8x32xf32>
    %c0_107 = arith.constant 0 : index
    %c0_108 = arith.constant 0 : index
    %c832 = arith.constant 832 : index
    %187 = vector.load %arg4[%c0_107, %c0_108, %c832] : memref<1x8x1024xf32, #tpu.memory_space<vmem>>, vector<1x8x32xf32>
    %188 = vector.shape_cast %187 : vector<1x8x32xf32> to vector<8x32xf32>
    %189 = vector.shape_cast %186 : vector<8x32xf32> to vector<1x8x32xf32>
    tpu.vector_store %arg4[%c0_107, %c0_108, %c832], %189 {strides = array<i32>} : memref<1x8x1024xf32, #tpu.memory_space<vmem>>, vector<1x8x32xf32>,
    %190 = vector.extract_strided_slice %185 {offsets = [8, 0], sizes = [8, 32], strides = [1, 1]} : vector<16x32xf32> to vector<8x32xf32>
    %c0_109 = arith.constant 0 : index
    %c0_110 = arith.constant 0 : index
    %c864 = arith.constant 864 : index
    %191 = vector.load %arg4[%c0_109, %c0_110, %c864] : memref<1x8x1024xf32, #tpu.memory_space<vmem>>, vector<1x8x32xf32>
    %192 = vector.shape_cast %191 : vector<1x8x32xf32> to vector<8x32xf32>
    %193 = vector.shape_cast %190 : vector<8x32xf32> to vector<1x8x32xf32>
    tpu.vector_store %arg4[%c0_109, %c0_110, %c864], %193 {strides = array<i32>} : memref<1x8x1024xf32, #tpu.memory_space<vmem>>, vector<1x8x32xf32>,
    %194 = vector.extract_strided_slice %67 {offsets = [0, 504], sizes = [16, 32], strides = [1, 1]} : vector<16x576xf32> to vector<16x32xf32>
    %195 = vector.extract_strided_slice %194 {offsets = [0, 0], sizes = [8, 32], strides = [1, 1]} : vector<16x32xf32> to vector<8x32xf32>
    %c0_111 = arith.constant 0 : index
    %c0_112 = arith.constant 0 : index
    %c896 = arith.constant 896 : index
    %196 = vector.load %arg4[%c0_111, %c0_112, %c896] : memref<1x8x1024xf32, #tpu.memory_space<vmem>>, vector<1x8x32xf32>
    %197 = vector.shape_cast %196 : vector<1x8x32xf32> to vector<8x32xf32>
    %198 = vector.shape_cast %195 : vector<8x32xf32> to vector<1x8x32xf32>
    tpu.vector_store %arg4[%c0_111, %c0_112, %c896], %198 {strides = array<i32>} : memref<1x8x1024xf32, #tpu.memory_space<vmem>>, vector<1x8x32xf32>,
    %199 = vector.extract_strided_slice %194 {offsets = [8, 0], sizes = [8, 32], strides = [1, 1]} : vector<16x32xf32> to vector<8x32xf32>
    %c0_113 = arith.constant 0 : index
    %c0_114 = arith.constant 0 : index
    %c928 = arith.constant 928 : index
    %200 = vector.load %arg4[%c0_113, %c0_114, %c928] : memref<1x8x1024xf32, #tpu.memory_space<vmem>>, vector<1x8x32xf32>
    %201 = vector.shape_cast %200 : vector<1x8x32xf32> to vector<8x32xf32>
    %202 = vector.shape_cast %199 : vector<8x32xf32> to vector<1x8x32xf32>
    tpu.vector_store %arg4[%c0_113, %c0_114, %c928], %202 {strides = array<i32>} : memref<1x8x1024xf32, #tpu.memory_space<vmem>>, vector<1x8x32xf32>,
    %203 = vector.extract_strided_slice %67 {offsets = [0, 540], sizes = [16, 32], strides = [1, 1]} : vector<16x576xf32> to vector<16x32xf32>
    %204 = vector.extract_strided_slice %203 {offsets = [0, 0], sizes = [8, 32], strides = [1, 1]} : vector<16x32xf32> to vector<8x32xf32>
    %c0_115 = arith.constant 0 : index
    %c0_116 = arith.constant 0 : index
    %c960 = arith.constant 960 : index
    %205 = vector.load %arg4[%c0_115, %c0_116, %c960] : memref<1x8x1024xf32, #tpu.memory_space<vmem>>, vector<1x8x32xf32>
    %206 = vector.shape_cast %205 : vector<1x8x32xf32> to vector<8x32xf32>
    %207 = vector.shape_cast %204 : vector<8x32xf32> to vector<1x8x32xf32>
    tpu.vector_store %arg4[%c0_115, %c0_116, %c960], %207 {strides = array<i32>} : memref<1x8x1024xf32, #tpu.memory_space<vmem>>, vector<1x8x32xf32>,
    %208 = vector.extract_strided_slice %203 {offsets = [8, 0], sizes = [8, 32], strides = [1, 1]} : vector<16x32xf32> to vector<8x32xf32>
    %c0_117 = arith.constant 0 : index
    %c0_118 = arith.constant 0 : index
    %c992 = arith.constant 992 : index
    %209 = vector.load %arg4[%c0_117, %c0_118, %c992] : memref<1x8x1024xf32, #tpu.memory_space<vmem>>, vector<1x8x32xf32>
    %210 = vector.shape_cast %209 : vector<1x8x32xf32> to vector<8x32xf32>
    %211 = vector.shape_cast %208 : vector<8x32xf32> to vector<1x8x32xf32>
    tpu.vector_store %arg4[%c0_117, %c0_118, %c992], %211 {strides = array<i32>} : memref<1x8x1024xf32, #tpu.memory_space<vmem>>, vector<1x8x32xf32>,
    return
  }
  func.func @transform_0(%arg0: i32) -> (i32, i32, i32) {
    %c0_i32 = arith.constant 0 : i32
    %c0_i32_0 = arith.constant 0 : i32
    %c0_i32_1 = arith.constant 0 : i32
    return %arg0, %c0_i32, %c0_i32_0 : i32, i32, i32
  }
  func.func @transform_1(%arg0: i32) -> (i32, i32) {
    %c0_i32 = arith.constant 0 : i32
    %c0_i32_0 = arith.constant 0 : i32
    %c0_i32_1 = arith.constant 0 : i32
    return %c0_i32, %c0_i32_0 : i32, i32
  }
  func.func @transform_2(%arg0: i32) -> (i32, i32) {
    %c0_i32 = arith.constant 0 : i32
    %c0_i32_0 = arith.constant 0 : i32
    %c0_i32_1 = arith.constant 0 : i32
    return %c0_i32, %c0_i32_0 : i32, i32
  }
  func.func @transform_3(%arg0: i32) -> (i32, i32, i32) {
    %c0_i32 = arith.constant 0 : i32
    %c0_i32_0 = arith.constant 0 : i32
    %c0_i32_1 = arith.constant 0 : i32
    return %arg0, %c0_i32, %c0_i32_0 : i32, i32, i32
  }
}

</mosaic_0001>

<bundles_post_ra>
// kernel: tile.8
= control target key start
LH: loop header
LB: loop body
LE: loop exit
PB: predicated region body
PF: predicated region fallthrough
CT: control target
= control target key end

     0   :  { %s22_s0 = inlined_call_operand.vmem [shape: f32[8], index: 0, kind: input, shape index: {}]   ;;  %s23_s1 = inlined_call_operand.vmem [shape: f32[2,8], index: 1, kind: output, shape index: {}]  }
   0x1   :  { %v4_v0 = vld [vmem:[%s22_s0] ss:$0 sm:$0xff] }
   0x2   :  { %5 = vst [vmem:[%s23_s1] sm:$0x3] %v4_v0 }

// kernel: tile.0
= control target key start
LH: loop header
LB: loop body
LE: loop exit
PB: predicated region body
PF: predicated region fallthrough
CT: control target
= control target key end

     0   :  { %s66_s8 = smov 125   ;;  %vm7_vm0 = vcmask 7168   ;;  %s67_s11 = smov 126   ;;  %s117_s0 = inlined_call_operand.vmem [shape: f32[2,8], index: 0, kind: input, shape index: {}]   ;;  %s118_s1 = inlined_call_operand.vmem [shape: f32[16,1], index: 1, kind: output, shape index: {}]  }
   0x1   :  { %v4_v0 = vld [vmem:[%s117_s0] sm:$0x3]  ;;  %s65_s0 = smov 127   ;;  %s68_s12 = smov 124  }
   0x2   :  { %5 = vst [vmem:[#allocation0] sm:$0x3] %v4_v0  ;;  %s69_s13 = smov 123   ;;  %s70_s14 = smov 122  }
   0x3   :  { %s71_s15 = smov 121  }
   0x9   :  { %v9_v1 = vld [vmem:[#allocation0] sm:$0x3]  }
   0xa   :  { %v21_v2 = vld [vmem:[#allocation0] sm:$0x3]   ;;  %10 = vrot.lane.b32.xlu0 %v9_v1, %s65_s0 }
   0xb   :  { %22 = vrot.lane.b32.xlu1 %v21_v2, %s66_s8  ;;  %v15_v3 = vld [vmem:[#allocation0] sm:$0x3]  }
   0xc   :  { %v27_v4 = vld [vmem:[#allocation0] sm:$0x3]  }
   0xd   :  { %v6_v5 = vld [vmem:[#allocation0] sm:$0x3]  }
   0xe   :  { %8 = vst.msk [vmem:[%s118_s1] ss:$8 sm:$0x3] %vm7_vm0, %v6_v5   ;;  %16 = vrot.lane.b32.xlu0 %v15_v3, %s67_s11  ;;  %v33_v6 = vld [vmem:[#allocation0] sm:$0x3]  }
   0xf   :  { %28 = vrot.lane.b32.xlu1 %v27_v4, %s68_s12  ;;  %v39_v7 = vld [vmem:[#allocation0] sm:$0x3]  }
  0x10   :  { %v45_v8 = vld [vmem:[#allocation0] sm:$0x3]  }
  0x12   :  { %34 = vrot.lane.b32.xlu0 %v33_v6, %s69_s13 }
  0x13   :  { %40 = vrot.lane.b32.xlu1 %v39_v7, %s70_s14 }
  0x16   :  { %46 = vrot.lane.b32.xlu0 %v45_v8, %s71_s15 }
  0x7c   :  { %v11_v9 = vpop.permute.xlu0 %10  }
  0x7d   :  { %v23_v10 = vpop.permute.xlu1 %22   ;;  %51 = vst.msk [vmem:[%s118_s1 + $0x1] ss:$8 sm:$0x3] %vm7_vm0, %v11_v9  }
  0x7e   :  { %53 = vst.msk [vmem:[%s118_s1 + $0x3] ss:$8 sm:$0x3] %vm7_vm0, %v23_v10  }
  0x80   :  { %v17_v11 = vpop.permute.xlu0 %16  }
  0x81   :  { %v29_v12 = vpop.permute.xlu1 %28   ;;  %52 = vst.msk [vmem:[%s118_s1 + $0x2] ss:$8 sm:$0x3] %vm7_vm0, %v17_v11  }
  0x82   :  { %54 = vst.msk [vmem:[%s118_s1 + $0x4] ss:$8 sm:$0x3] %vm7_vm0, %v29_v12  }
  0x84   :  { %v35_v13 = vpop.permute.xlu0 %34  }
  0x85   :  { %v41_v14 = vpop.permute.xlu1 %40   ;;  %55 = vst.msk [vmem:[%s118_s1 + $0x5] ss:$8 sm:$0x3] %vm7_vm0, %v35_v13  }
  0x86   :  { %56 = vst.msk [vmem:[%s118_s1 + $0x6] ss:$8 sm:$0x3] %vm7_vm0, %v41_v14  }
  0x88   :  { %v47_v15 = vpop.permute.xlu0 %46  }
  0x89   :  { %57 = vst.msk [vmem:[%s118_s1 + $0x7] ss:$8 sm:$0x3] %vm7_vm0, %v47_v15  }

// kernel: cnn_doubler_forward.1
= control target key start
LH: loop header
LB: loop body
LE: loop exit
PB: predicated region body
PF: predicated region fallthrough
CT: control target
= control target key end

     0   :  { %s4317_s12 = smov 0   ;;  %s5001_s0 = inlined_call_operand.vmem [shape: f32[2,4,684], index: 0, kind: input, shape index: {}]   ;;  %s5002_s1 = inlined_call_operand.vmem [shape: f32[16,48], index: 1, kind: input, shape index: {}]   ;;  %s5003_s2 = inlined_call_operand.vmem [shape: f32[16,1], index: 2, kind: input, shape index: {}]   ;;  %s5004_s3 = inlined_call_operand.vmem [shape: f32[2,8,1024], index: 3, kind: output, shape index: {}]  }
   0x1 LB: > { %s3842_s13 = sadd.s32 4294967295, %s4258_s12   ;;  %p3846_p0 = scmp.ge.s32.totalorder %s4258_s12, 1  ;;  %s4258_s12 = sphi %s4317_s12, %s13_s12  }
   0x2   : > { %p137_p1 = scmp.lt.s32.totalorder %s4258_s12, 3 }
   0x4   : > { %p138_p2 = pnand %p3846_p0, %p137_p1 }
   0x5   : > { %v4328_v0 = vld [vmem:[%s5002_s1 + $0x8] sm:$0xff] (!%p138_p2)  ;;  %v4333_v1 = vld [vmem:[%s5002_s1] sm:$0xff] (!%p138_p2)  ;;  %vm193_vm0 = vcmask (!%p138_p2), 31744   ;;  %s4260_s18 = smov (!%p138_p2), 124   ;;  %p161_p3 = scmp.lt.s32.totalorder (!%p138_p2), %s3842_s13, 1  ;;  %v4261_v2 = vmov (!%p138_p2), 0.0  }
   0x6   : > { %141 = sbr.rel (%p138_p2) target bundleno = 694 (0x2b6), region = 32  ;;  %459 = vrot.lane.b32.xlu1 (!%p138_p2), %v4328_v0, %s4260_s18  ;;  %457 = vrot.lane.b32.xlu0 (!%p138_p2), %v4333_v1, %s4260_s18  ;;  %s4262_s19 = smov (!%p138_p2), 120   ;;  %vm200_vm1 = vcmask (!%p138_p2), 1043456   ;;  %v4278_v21 = vmov (!%p138_p2), 0   ;;  %vm1044_vm2 = vcmask (!%p138_p2), 1022976   ;;  %vm476_vm3 = vcmask (!%p138_p2), 1039360  }
   0x7   : > { %4023 = vmatprep.mubr.msk.f32.mxu0 (!%p138_p2), %vm193_vm0, %v4333_v1  ;;  %275 = vmatprep.mubr.f32.mxu1 (!%p138_p2), %v4261_v2  ;;  %s4263_s24 = smov (!%p138_p2), 126   ;;  %s4264_s25 = smov (!%p138_p2), 127   ;;  %vm1328_vm4 = vcmask (!%p138_p2), 752640   ;;  %vm760_vm5 = vcmask (!%p138_p2), 1031168   ;;  %v171_v50 = vld [vmem:[%s5003_s2] sm:$0xff] (!%p138_p2)  ;;  %v172_v52 = vld [vmem:[%s5003_s2 + $0x8] sm:$0xff] (!%p138_p2) }
   0x8   : > { %s4265_s26 = smov (!%p138_p2), 125   ;;  %s4266_s27 = smov (!%p138_p2), 116   ;;  %4247 = vset.pattern.permute.xlu1 (!%p138_p2), %v4278_v21  ;;  %4248 = vset.pattern.permute.xlu0 (!%p138_p2), %v4278_v21  ;;  %vm1612_vm6 = vcmask (!%p138_p2), 744448   ;;  %vm1896_vm7 = vcmask (!%p138_p2), 736256   ;;  %vm2180_vm8 = vcmask (!%p138_p2), 728064   ;;  %vm2467_vm9 = vcmask (!%p138_p2), 457728  }
   0x9   : > { %s4267_s28 = smov (!%p138_p2), 92   ;;  %s4268_s29 = smov (!%p138_p2), 112   ;;  %vm2755_vm10 = vcmask (!%p138_p2), 449536   ;;  %vm3043_vm11 = vcmask (!%p138_p2), 441344   ;;  %vm3331_vm12 = vcmask (!%p138_p2), 433152   ;;  %vm3620_vm14 = vcmask (!%p138_p2), 261120  }
   0xa   : > { %743 = vrot.lane.b32.xlu1 (!%p138_p2), %v4328_v0, %s4262_s19  ;;  %741 = vrot.lane.b32.xlu0 (!%p138_p2), %v4333_v1, %s4262_s19  ;;  %s4269_s30 = smov (!%p138_p2), 91   ;;  %s4270_s4 = smov (!%p138_p2), 108  }
   0xb   : > { %s4271_s5 = smov (!%p138_p2), 90   ;;  %s4272_s6 = smov (!%p138_p2), 104  }
   0xc   : > { %s4273_s7 = smov (!%p138_p2), 89   ;;  %s4274_s8 = smov (!%p138_p2), 100  }
   0xd   : > { %s5006_s13 = smov (!%p161_p3, %s3842_s13), 1  ;;  %s4275_s9 = smov 56  }
   0xe   : > { %s4201_s20 = smul.u32 24, %s5006_s13  ;;  %s4276_s10 = smov 96  }
   0xf   : > { %s4277_s11 = smov 55   ;;  %s4279_s14 = smov 54  }
  0x10   : > { %s4350_s23 = scalar_lea.vmem %s5001_s0, %s4201_s20  ;;  %s4280_s15 = smov 88  }
  0x11   : > { %v736_v3 = vld [vmem:[%s4350_s23 + $0x10] sm:$0xf]  ;;  %v4357_v5 = vld [vmem:[%s4350_s23] sm:$0xff]  ;;  %v4360_v6 = vld [vmem:[%s4350_s23 + $0x8] sm:$0xff]  ;;  %s4281_s16 = smov 53   ;;  %s4282_s17 = smov 84  }
  0x12   : > { %v452_v4 = vld [vmem:[%s4350_s23 + $0x10] sm:$0xf]  ;;  %758 = vrot.lane.b32.xlu1 %v736_v3, %s4263_s24  ;;  %v4364_v7 = vcombine.high %v4357_v5, %v4357_v5  ;;  %v4381_v9 = vcombine.high %v4360_v6, %v4360_v6 }
  0x13   : > { %474 = vrot.lane.b32.xlu0 %v452_v4, %s4264_s25  ;;  %v185_v8 = vld [vmem:[%s4350_s23 + $0x10] sm:$0xf] }
  0x14   : > { %3850 = vmatprep.subr.msk.mxu1 %vm200_vm1, %v4364_v7  ;;  %4021 = vmatprep.subr.msk.mxu0 %vm200_vm1, %v185_v8  ;;  %v1020_v10 = vld [vmem:[%s4350_s23 + $0x10] sm:$0xf] }
  0x15   : > { %3851 = vmatpush1.msk.msra.mxu1 %vm200_vm1, %v4357_v5  ;;  %4022 = vmatpush3.msk.msra.mxu0 %vm200_vm1, %v185_v8  ;;  %v1304_v11 = vld [vmem:[%s4350_s23 + $0x10] sm:$0xf] }
  0x16   : > { %1038 = vrot.lane.b32.xlu1 %v4360_v6, %s4265_s26  ;;  %3852 = vmatmul.mubr.msk.f32.vlgmr.msra.gmra.mrb[0].mxu1 %vm193_vm0, %v4333_v1  ;;  %v1588_v12 = vld [vmem:[%s4350_s23 + $0x10] sm:$0xf] }
  0x17   : > { %1036 = vrot.lane.b32.xlu0 %v4364_v7, %s4265_s26  ;;  %4024 = vmatmul.mubr.msk.f32.vlgmr.msra.gmra.mrb[0].mxu0 %vm193_vm0, %v4328_v0  ;;  %v1872_v13 = vld [vmem:[%s4350_s23 + $0x10] sm:$0xf] }
  0x18   : > { %281 = vmatprep.mubr.f32.mxu1 %v4261_v2  ;;  %3854 = vmatprep.subr.msk.mxu1 %vm200_vm1, %v4381_v9  ;;  %v2156_v14 = vld [vmem:[%s4350_s23 + $0x10] sm:$0xf] }
  0x19   : > { %3855 = vmatpush1.msk.msra.mxu1 %vm200_vm1, %v4360_v6  ;;  %v4472_v15 = vld [vmem:[%s4350_s23 + $0x10] sm:$0xff]  ;;  %s3984_s23 = sshll.u32 %s5006_s13, 6  ;;  %s4283_s13 = smov 24  }
  0x1a   : > { %1025 = vrot.lane.b32.xlu1 %v4333_v1, %s4266_s27  ;;  %3853 = vmatmul.mubr.msk.f32.gmra.mrb[2].mxu1 %vm193_vm0, %v4328_v0  ;;  %v4476_v16 = vcombine.high %v4472_v15, %v4472_v15 }
  0x1b   : > { %1034 = vrot.lane.b32.xlu0 %v4357_v5, %s4265_s26  ;;  %352 = vmatprep.mubr.f32.mxu1 %v4261_v2 }
  0x1e   : > { %470 = vrot.lane.b32.xlu1 %v4360_v6, %s4264_s25  ;;  %3856 = vmatmul.mubr.msk.f32.vlgmr.msra.gmra.mrb[4].mxu1 %vm193_vm0, %v4333_v1 }
  0x1f   : > { %468 = vrot.lane.b32.xlu0 %v4364_v7, %s4264_s25  ;;  %358 = vmatprep.mubr.f32.mxu1 %v4261_v2 }
  0x22   : > { %1027 = vrot.lane.b32.xlu1 %v4328_v0, %s4266_s27  ;;  %3857 = vmatmul.mubr.msk.f32.gmra.mrb[6].mxu1 %vm193_vm0, %v4328_v0 }
  0x23   : > { %466 = vrot.lane.b32.xlu0 %v4357_v5, %s4264_s25  ;;  %559 = vmatprep.mubr.f32.mxu1 %v4261_v2 }
  0x26   : > { %1320 = vrot.lane.b32.xlu1 %v4364_v7, %s4267_s28 }
  0x27   : > { %1042 = vrot.lane.b32.xlu0 %v1020_v10, %s4265_s26 }
  0x2a   : > { %472 = vrot.lane.b32.xlu1 %v4381_v9, %s4264_s25 }
  0x2b   : > { %1322 = vrot.lane.b32.xlu0 %v4360_v6, %s4267_s28 }
  0x2e   : > { %1309 = vrot.lane.b32.xlu1 %v4333_v1, %s4268_s29 }
  0x2f   : > { %1318 = vrot.lane.b32.xlu0 %v4357_v5, %s4267_s28 }
  0x32   : > { %752 = vrot.lane.b32.xlu1 %v4364_v7, %s4263_s24 }
  0x33   : > { %1311 = vrot.lane.b32.xlu0 %v4328_v0, %s4268_s29 }
  0x36   : > { %1326 = vrot.lane.b32.xlu1 %v1304_v11, %s4267_s28 }
  0x37   : > { %754 = vrot.lane.b32.xlu0 %v4360_v6, %s4263_s24 }
  0x3a   : > { %1604 = vrot.lane.b32.xlu1 %v4364_v7, %s4269_s30 }
  0x3b   : > { %750 = vrot.lane.b32.xlu0 %v4357_v5, %s4263_s24 }
  0x3e   : > { %1602 = vrot.lane.b32.xlu1 %v4357_v5, %s4269_s30 }
  0x3f   : > { %1606 = vrot.lane.b32.xlu0 %v4360_v6, %s4269_s30 }
  0x42   : > { %756 = vrot.lane.b32.xlu1 %v4381_v9, %s4263_s24 }
  0x43   : > { %1593 = vrot.lane.b32.xlu0 %v4333_v1, %s4270_s4 }
  0x46   : > { %1610 = vrot.lane.b32.xlu1 %v1588_v12, %s4269_s30 }
  0x47   : > { %1595 = vrot.lane.b32.xlu0 %v4328_v0, %s4270_s4 }
  0x4a   : > { %1890 = vrot.lane.b32.xlu1 %v4360_v6, %s4271_s5 }
  0x4b   : > { %1888 = vrot.lane.b32.xlu0 %v4364_v7, %s4271_s5 }
  0x4e   : > { %1886 = vrot.lane.b32.xlu1 %v4357_v5, %s4271_s5 }
  0x4f   : > { %1040 = vrot.lane.b32.xlu0 %v4381_v9, %s4265_s26  ;;  %s4873_s26 = scalar_lea.vmem %s5004_s3, %s3984_s23 }
  0x52   : > { %1879 = vrot.lane.b32.xlu1 %v4328_v0, %s4272_s6 }
  0x53   : > { %1877 = vrot.lane.b32.xlu0 %v4333_v1, %s4272_s6  ;;  %s4288_s6 = smov 28  }
  0x56   : > { %1894 = vrot.lane.b32.xlu1 %v1872_v13, %s4271_s5 }
  0x57   : > { %1324 = vrot.lane.b32.xlu0 %v4381_v9, %s4267_s28 }
  0x5a   : > { %2174 = vrot.lane.b32.xlu1 %v4360_v6, %s4273_s7 }
  0x5b   : > { %2172 = vrot.lane.b32.xlu0 %v4364_v7, %s4273_s7 }
  0x5e   : > { %2161 = vrot.lane.b32.xlu1 %v4333_v1, %s4274_s8 }
  0x5f   : > { %2170 = vrot.lane.b32.xlu0 %v4357_v5, %s4273_s7 }
  0x62   : > { %2163 = vrot.lane.b32.xlu1 %v4328_v0, %s4274_s8 }
  0x63   : > { %1608 = vrot.lane.b32.xlu0 %v4381_v9, %s4269_s30  ;;  %s4285_s30 = smov 80  }
  0x66   : > { %2457 = vrot.lane.b32.xlu1 %v4364_v7, %s4275_s9 }
  0x67   : > { %2178 = vrot.lane.b32.xlu0 %v2156_v14, %s4273_s7 }
  0x6a   : > { %1892 = vrot.lane.b32.xlu1 %v4381_v9, %s4271_s5  ;;  %s4286_s5 = smov 8  }
  0x6b   : > { %2459 = vrot.lane.b32.xlu0 %v4360_v6, %s4275_s9 }
  0x6e   : > { %2445 = vrot.lane.b32.xlu1 %v4333_v1, %s4276_s10 }
  0x6f   : > { %2455 = vrot.lane.b32.xlu0 %v4357_v5, %s4275_s9 }
  0x72   : > { %2463 = vrot.lane.b32.xlu1 %v4472_v15, %s4275_s9 }
  0x73   : > { %2447 = vrot.lane.b32.xlu0 %v4328_v0, %s4276_s10 }
  0x76   : > { %2176 = vrot.lane.b32.xlu1 %v4381_v9, %s4273_s7  ;;  %s4290_s7 = smov 12  }
  0x77   : > { %2465 = vrot.lane.b32.xlu0 %v4476_v16, %s4275_s9 }
  0x78   : > { %v4489_v17 = vpop.permute.xlu1 %459  ;;  %v4491_v18 = vpop.permute.xlu0 %457 }
  0x79   : > { %4028 = vmatprep.mubr.msk.f32.mxu0 %vm193_vm0, %v4491_v18 }
  0x7a   : > { %2747 = vrot.lane.b32.xlu1 %v4360_v6, %s4277_s11 }
  0x7b   : > { %2745 = vrot.lane.b32.xlu0 %v4364_v7, %s4277_s11 }
  0x7c   : > { %v4499_v19 = vpop.permute.xlu1 %743  ;;  %v4501_v20 = vpop.permute.xlu0 %741 }
  0x7e   : > { %2733 = vrot.lane.b32.xlu1 %v4333_v1, %s4267_s28 }
  0x7f   : > { %2743 = vrot.lane.b32.xlu0 %v4357_v5, %s4277_s11 }
  0x82   : > { %2735 = vrot.lane.b32.xlu1 %v4328_v0, %s4267_s28  ;;  %s4284_s28 = smov 68  }
  0x83   : > { %2461 = vrot.lane.b32.xlu0 %v4381_v9, %s4275_s9 }
  0x84   : > { %v4507_v22 = vpop.permute.xlu1 %758 }
  0x85   : > { %v475_v23 = vpop.permute.xlu0 %474 }
  0x86   : > { %4026 = vmatprep.subr.msk.mxu0 %vm200_vm1, %v475_v23  ;;  %2753 = vrot.lane.b32.xlu1 %v4476_v16, %s4277_s11 }
  0x87   : > { %2751 = vrot.lane.b32.xlu0 %v4472_v15, %s4277_s11  ;;  %4027 = vmatpush3.msk.msra.mxu0 %vm200_vm1, %v475_v23 }
  0x88   : > { %4029 = vmatmul.mubr.msk.f32.vlgmr.msra.gmra.mrb[0].mxu0 %vm193_vm0, %v4489_v17  ;;  %v4517_v24 = vpop.permute.xlu1 %1038  ;;  %4031 = vmatprep.subr.msk.mxu0 %vm200_vm1, %v4507_v22 }
  0x89   : > { %v1037_v25 = vpop.permute.xlu0 %1036  ;;  %4033 = vmatprep.mubr.msk.f32.mxu0 %vm193_vm0, %v4501_v20  ;;  %4032 = vmatpush3.msk.msra.mxu0 %vm200_vm1, %v4507_v22 }
  0x8a   : > { %v1046_v26 = vsel %vm1044_vm2, %v1037_v25, %v4517_v24  ;;  %3035 = vrot.lane.b32.xlu1 %v4360_v6, %s4279_s14 }
  0x8b   : > { %3033 = vrot.lane.b32.xlu0 %v4364_v7, %s4279_s14  ;;  %3883 = vmatprep.subr.msk.mxu0 %vm200_vm1, %v1046_v26 }
  0x8c   : > { %v4532_v27 = vpop.permute.xlu1 %1025 }
  0x8d   : > { %v1035_v28 = vpop.permute.xlu0 %1034 }
  0x8e   : > { %v1045_v29 = vsel %vm1044_vm2, %v1035_v28, %v1037_v25  ;;  %3031 = vrot.lane.b32.xlu1 %v4357_v5, %s4279_s14 }
  0x8f   : > { %2749 = vrot.lane.b32.xlu0 %v4381_v9, %s4277_s11  ;;  %s4294_s11 = smov 72  }
  0x90   : > { %4034 = vmatmul.mubr.msk.f32.vlgmr.msra.gmra.mrb[0].mxu0 %vm193_vm0, %v4499_v19  ;;  %v471_v30 = vpop.permute.xlu1 %470 }
  0x91   : > { %v469_v31 = vpop.permute.xlu0 %468  ;;  %3884 = vmatpush1.msk.msra.mxu0 %vm200_vm1, %v1045_v29  ;;  %1127 = vmatprep.mubr.f32.mxu0 %v4261_v2 }
  0x92   : > { %v478_v32 = vsel %vm476_vm3, %v469_v31, %v471_v30  ;;  %3023 = vrot.lane.b32.xlu1 %v4328_v0, %s4280_s15 }
  0x93   : > { %3021 = vrot.lane.b32.xlu0 %v4333_v1, %s4280_s15  ;;  %3861 = vmatprep.subr.msk.mxu1 %vm200_vm1, %v478_v32 }
  0x94   : > { %3885 = vmatmul.mubr.msk.f32.vlgmr.msra.gmra.mrb[2].mxu0 %vm193_vm0, %v4532_v27  ;;  %v4551_v33 = vpop.permute.xlu1 %1027 }
  0x95   : > { %v467_v34 = vpop.permute.xlu0 %466  ;;  %1133 = vmatprep.mubr.f32.mxu0 %v4261_v2 }
  0x96   : > { %v477_v35 = vsel %vm476_vm3, %v467_v34, %v469_v31  ;;  %3041 = vrot.lane.b32.xlu1 %v4476_v16, %s4279_s14 }
  0x97   : > { %3039 = vrot.lane.b32.xlu0 %v4472_v15, %s4279_s14  ;;  %3862 = vmatpush1.msk.msra.mxu1 %vm200_vm1, %v477_v35 }
  0x98   : > { %3863 = vmatmul.mubr.msk.f32.vlgmr.msra.gmra.mrb[0].mxu1 %vm193_vm0, %v4491_v18  ;;  %3886 = vmatmul.mubr.msk.f32.gmra.mrb[4].mxu0 %vm193_vm0, %v4551_v33  ;;  %v1321_v36 = vpop.permute.xlu1 %1320 }
  0x99   : > { %v4564_v37 = vpop.permute.xlu0 %1042  ;;  %4038 = vmatprep.mubr.msk.f32.mxu0 %vm193_vm0, %v4532_v27  ;;  %565 = vmatprep.mubr.f32.mxu1 %v4261_v2 }
  0x9a   : > { %4036 = vmatprep.subr.msk.mxu0 %vm200_vm1, %v4564_v37  ;;  %3321 = vrot.lane.b32.xlu1 %v4364_v7, %s4281_s16 }
  0x9b   : > { %3037 = vrot.lane.b32.xlu0 %v4381_v9, %s4279_s14  ;;  %4037 = vmatpush3.msk.msra.mxu0 %vm200_vm1, %v4564_v37  ;;  %s4295_s14 = smov 44  }
  0x9c   : > { %3864 = vmatmul.mubr.msk.f32.gmra.mrb[2].mxu1 %vm193_vm0, %v4489_v17  ;;  %4039 = vmatmul.mubr.msk.f32.vlgmr.msra.gmra.mrb[0].mxu0 %vm193_vm0, %v4551_v33  ;;  %v473_v38 = vpop.permute.xlu1 %472 }
  0x9d   : > { %v4581_v39 = vpop.permute.xlu0 %1322  ;;  %v479_v40 = vsel %vm476_vm3, %v471_v30, %v473_v38  ;;  %v480_v41 = vsel %vm476_vm3, %v473_v38, %v475_v23  ;;  %636 = vmatprep.mubr.f32.mxu1 %v4261_v2  ;;  %1411 = vmatprep.mubr.f32.mxu0 %v4261_v2 }
  0x9e   : > { %v1330_v42 = vsel %vm1328_vm4, %v1321_v36, %v4581_v39  ;;  %3319 = vrot.lane.b32.xlu1 %v4357_v5, %s4281_s16  ;;  %3865 = vmatprep.subr.msk.mxu1 %vm200_vm1, %v480_v41 }
  0x9f   : > { %3323 = vrot.lane.b32.xlu0 %v4360_v6, %s4281_s16  ;;  %3894 = vmatprep.subr.msk.mxu0 %vm200_vm1, %v1330_v42 }
  0xa0   : > { %3866 = vmatpush1.msk.msra.mxu1 %vm200_vm1, %v479_v40  ;;  %v4596_v43 = vpop.permute.xlu1 %1309 }
  0xa1   : > { %v1319_v44 = vpop.permute.xlu0 %1318  ;;  %3867 = vmatmul.mubr.msk.f32.vlgmr.msra.gmra.mrb[4].mxu1 %vm193_vm0, %v4491_v18 }
  0xa2   : > { %v1329_v45 = vsel %vm1328_vm4, %v1319_v44, %v1321_v36  ;;  %3325 = vrot.lane.b32.xlu1 %v4381_v9, %s4281_s16  ;;  %642 = vmatprep.mubr.f32.mxu1 %v4261_v2 }
  0xa3   : > { %3309 = vrot.lane.b32.xlu0 %v4333_v1, %s4282_s17  ;;  %3895 = vmatpush1.msk.msra.mxu0 %vm200_vm1, %v1329_v45 }
  0xa4   : > { %3896 = vmatmul.mubr.msk.f32.vlgmr.msra.gmra.mrb[2].mxu0 %vm193_vm0, %v4596_v43  ;;  %v753_v46 = vpop.permute.xlu1 %752 }
  0xa5   : > { %v4609_v47 = vpop.permute.xlu0 %1311  ;;  %3868 = vmatmul.mubr.msk.f32.gmra.mrb[6].mxu1 %vm193_vm0, %v4489_v17  ;;  %1417 = vmatprep.mubr.f32.mxu0 %v4261_v2 }
  0xa6   : > { %3311 = vrot.lane.b32.xlu1 %v4328_v0, %s4282_s17  ;;  %843 = vmatprep.mubr.f32.mxu1 %v4261_v2 }
  0xa7   : > { %3327 = vrot.lane.b32.xlu0 %v4472_v15, %s4281_s16 }
  0xa8   : > { %3897 = vmatmul.mubr.msk.f32.gmra.mrb[4].mxu0 %vm193_vm0, %v4609_v47  ;;  %v4621_v48 = vpop.permute.xlu1 %1326 }
  0xa9   : > { %v755_v49 = vpop.permute.xlu0 %754  ;;  %4043 = vmatprep.mubr.msk.f32.mxu0 %vm193_vm0, %v4596_v43  ;;  %4041 = vmatprep.subr.msk.mxu0 %vm200_vm1, %v4621_v48 }
  0xaa   : > { %v762_v51 = vsel %vm760_vm5, %v753_v46, %v755_v49  ;;  %4042 = vmatpush3.msk.msra.mxu0 %vm200_vm1, %v4621_v48  ;;  %175 = vperm.xlu1 %4247, %v171_v50  }
  0xab   : > { %3329 = vrot.lane.b32.xlu0 %v4476_v16, %s4281_s16  ;;  %3872 = vmatprep.subr.msk.mxu1 %vm200_vm1, %v762_v51 }
  0xac   : > { %4044 = vmatmul.mubr.msk.f32.vlgmr.msra.gmra.mrb[0].mxu0 %vm193_vm0, %v4609_v47  ;;  %v1605_v53 = vpop.permute.xlu1 %1604 }
  0xad   : > { %v751_v54 = vpop.permute.xlu0 %750  ;;  %1695 = vmatprep.mubr.f32.mxu0 %v4261_v2 }
  0xae   : > { %v761_v55 = vsel %vm760_vm5, %v751_v54, %v753_v46 }
  0xaf   : > { %3873 = vmatpush1.msk.msra.mxu1 %vm200_vm1, %v761_v55  ;;  %180 = vperm.xlu0 %4248, %v172_v52  }
  0xb0   : > { %3874 = vmatmul.mubr.msk.f32.vlgmr.msra.gmra.mrb[0].mxu1 %vm193_vm0, %v4501_v20  ;;  %v1603_v56 = vpop.permute.xlu1 %1602 }
  0xb1   : > { %v4646_v57 = vpop.permute.xlu0 %1606  ;;  %849 = vmatprep.mubr.f32.mxu1 %v4261_v2  ;;  %v1613_v58 = vsel %vm1612_vm6, %v1603_v56, %v1605_v53 }
  0xb2   : > { %v1614_v59 = vsel %vm1612_vm6, %v1605_v53, %v4646_v57 }
  0xb3   : > { %3905 = vmatprep.subr.msk.mxu0 %vm200_vm1, %v1614_v59 }
  0xb4   : > { %3875 = vmatmul.mubr.msk.f32.gmra.mrb[2].mxu1 %vm193_vm0, %v4499_v19  ;;  %3906 = vmatpush1.msk.msra.mxu0 %vm200_vm1, %v1613_v58  ;;  %v757_v60 = vpop.permute.xlu1 %756 }
  0xb5   : > { %v4656_v61 = vpop.permute.xlu0 %1593  ;;  %920 = vmatprep.mubr.f32.mxu1 %v4261_v2  ;;  %v763_v62 = vsel %vm760_vm5, %v755_v49, %v757_v60  ;;  %v764_v63 = vsel %vm760_vm5, %v757_v60, %v4507_v22 }
  0xb6   : > { %3907 = vmatmul.mubr.msk.f32.vlgmr.msra.gmra.mrb[2].mxu0 %vm193_vm0, %v4656_v61  ;;  %3876 = vmatprep.subr.msk.mxu1 %vm200_vm1, %v764_v63 }
  0xb7   : > { %1701 = vmatprep.mubr.f32.mxu0 %v4261_v2  ;;  %3877 = vmatpush1.msk.msra.mxu1 %vm200_vm1, %v763_v62 }
  0xb8   : > { %v4667_v0 = vpop.permute.xlu1 %1610  ;;  %3878 = vmatmul.mubr.msk.f32.vlgmr.msra.gmra.mrb[4].mxu1 %vm193_vm0, %v4501_v20 }
  0xb9   : > { %v4669_v1 = vpop.permute.xlu0 %1595  ;;  %926 = vmatprep.mubr.f32.mxu1 %v4261_v2  ;;  %4046 = vmatprep.subr.msk.mxu0 %vm200_vm1, %v4667_v0 }
  0xba   : > { %3908 = vmatmul.mubr.msk.f32.gmra.mrb[4].mxu0 %vm193_vm0, %v4669_v1 }
  0xbb   : > { %4048 = vmatprep.mubr.msk.f32.mxu0 %vm193_vm0, %v4656_v61  ;;  %4047 = vmatpush3.msk.msra.mxu0 %vm200_vm1, %v4667_v0 }
  0xbc   : > { %v4682_v3 = vpop.permute.xlu1 %1890  ;;  %3879 = vmatmul.mubr.msk.f32.gmra.mrb[6].mxu1 %vm193_vm0, %v4499_v19 }
  0xbd   : > { %v1889_v4 = vpop.permute.xlu0 %1888  ;;  %1204 = vmatprep.mubr.f32.mxu1 %v4261_v2 }
  0xbe   : > { %v1898_v5 = vsel %vm1896_vm7, %v1889_v4, %v4682_v3  ;;  %4049 = vmatmul.mubr.msk.f32.vlgmr.msra.gmra.mrb[0].mxu0 %vm193_vm0, %v4669_v1 }
  0xbf   : > { %3916 = vmatprep.subr.msk.mxu0 %vm200_vm1, %v1898_v5  ;;  %1979 = vmatprep.mubr.f32.mxu0 %v4261_v2 }
  0xc0   : > { %v1887_v6 = vpop.permute.xlu1 %1886 }
  0xc1   : > { %v1041_v7 = vpop.permute.xlu0 %1040  ;;  %v1897_v8 = vsel %vm1896_vm7, %v1887_v6, %v1889_v4 }
  0xc2   : > { %v1047_v9 = vsel %vm1044_vm2, %v4517_v24, %v1041_v7  ;;  %v1048_v10 = vsel %vm1044_vm2, %v1041_v7, %v4564_v37  ;;  %3917 = vmatpush1.msk.msra.mxu0 %vm200_vm1, %v1897_v8 }
  0xc3   : > { %3887 = vmatprep.subr.msk.mxu1 %vm200_vm1, %v1048_v10 }
  0xc4   : > { %3888 = vmatpush1.msk.msra.mxu1 %vm200_vm1, %v1047_v9  ;;  %v4701_v11 = vpop.permute.xlu1 %1879 }
  0xc5   : > { %v4703_v12 = vpop.permute.xlu0 %1877  ;;  %3889 = vmatmul.mubr.msk.f32.vlgmr.msra.gmra.mrb[4].mxu1 %vm193_vm0, %v4532_v27 }
  0xc6   : > { %3918 = vmatmul.mubr.msk.f32.vlgmr.msra.gmra.mrb[2].mxu0 %vm193_vm0, %v4703_v12  ;;  %1210 = vmatprep.mubr.f32.mxu1 %v4261_v2 }
  0xc7   : > { %1985 = vmatprep.mubr.f32.mxu0 %v4261_v2 }
  0xc8   : > { %v1895_v13 = vpop.permute.xlu1 %1894 }
  0xc9   : > { %v1325_v14 = vpop.permute.xlu0 %1324  ;;  %3890 = vmatmul.mubr.msk.f32.gmra.mrb[6].mxu1 %vm193_vm0, %v4551_v33  ;;  %4051 = vmatprep.subr.msk.mxu0 %vm200_vm1, %v1895_v13 }
  0xca   : > { %v1331_v15 = vsel %vm1328_vm4, %v4581_v39, %v1325_v14  ;;  %v1332_v16 = vsel %vm1328_vm4, %v1325_v14, %v4621_v48  ;;  %3919 = vmatmul.mubr.msk.f32.gmra.mrb[4].mxu0 %vm193_vm0, %v4701_v11  ;;  %1488 = vmatprep.mubr.f32.mxu1 %v4261_v2 }
  0xcb   : > { %3898 = vmatprep.subr.msk.mxu1 %vm200_vm1, %v1332_v16  ;;  %4053 = vmatprep.mubr.msk.f32.mxu0 %vm193_vm0, %v4703_v12 }
  0xcc   : > { %3899 = vmatpush1.msk.msra.mxu1 %vm200_vm1, %v1331_v15  ;;  %v2175_v17 = vpop.permute.xlu1 %2174  ;;  %4052 = vmatpush3.msk.msra.mxu0 %vm200_vm1, %v1895_v13 }
  0xcd   : > { %v2173_v18 = vpop.permute.xlu0 %2172  ;;  %3900 = vmatmul.mubr.msk.f32.vlgmr.msra.gmra.mrb[4].mxu1 %vm193_vm0, %v4596_v43 }
  0xce   : > { %v2182_v19 = vsel %vm2180_vm8, %v2173_v18, %v2175_v17  ;;  %4054 = vmatmul.mubr.msk.f32.vlgmr.msra.gmra.mrb[0].mxu0 %vm193_vm0, %v4701_v11  ;;  %1494 = vmatprep.mubr.f32.mxu1 %v4261_v2 }
  0xcf   : > { %3927 = vmatprep.subr.msk.mxu0 %vm200_vm1, %v2182_v19  ;;  %2263 = vmatprep.mubr.f32.mxu0 %v4261_v2 }
  0xd0   : > { %v2162_v20 = vpop.permute.xlu1 %2161 }
  0xd1   : > { %v2171_v21 = vpop.permute.xlu0 %2170  ;;  %3901 = vmatmul.mubr.msk.f32.gmra.mrb[6].mxu1 %vm193_vm0, %v4609_v47 }
  0xd2   : > { %v2181_v22 = vsel %vm2180_vm8, %v2171_v21, %v2173_v18  ;;  %1772 = vmatprep.mubr.f32.mxu1 %v4261_v2 }
  0xd3   : > { %3928 = vmatpush1.msk.msra.mxu0 %vm200_vm1, %v2181_v22 }
  0xd4   : > { %3929 = vmatmul.mubr.msk.f32.vlgmr.msra.gmra.mrb[2].mxu0 %vm193_vm0, %v2162_v20  ;;  %v2164_v23 = vpop.permute.xlu1 %2163 }
  0xd5   : > { %v1609_v24 = vpop.permute.xlu0 %1608  ;;  %2269 = vmatprep.mubr.f32.mxu0 %v4261_v2 }
  0xd6   : > { %v1615_v25 = vsel %vm1612_vm6, %v4646_v57, %v1609_v24  ;;  %v1616_v26 = vsel %vm1612_vm6, %v1609_v24, %v4667_v0 }
  0xd7   : > { %3909 = vmatprep.subr.msk.mxu1 %vm200_vm1, %v1616_v26 }
  0xd8   : > { %3910 = vmatpush1.msk.msra.mxu1 %vm200_vm1, %v1615_v25  ;;  %3930 = vmatmul.mubr.msk.f32.gmra.mrb[4].mxu0 %vm193_vm0, %v2164_v23  ;;  %v2458_v27 = vpop.permute.xlu1 %2457 }
  0xd9   : > { %v2179_v28 = vpop.permute.xlu0 %2178  ;;  %3911 = vmatmul.mubr.msk.f32.vlgmr.msra.gmra.mrb[4].mxu1 %vm193_vm0, %v4656_v61  ;;  %4058 = vmatprep.mubr.msk.f32.mxu0 %vm193_vm0, %v2162_v20 }
  0xda   : > { %4056 = vmatprep.subr.msk.mxu0 %vm200_vm1, %v2179_v28  ;;  %1778 = vmatprep.mubr.f32.mxu1 %v4261_v2 }
  0xdb   : > { %4057 = vmatpush3.msk.msra.mxu0 %vm200_vm1, %v2179_v28 }
  0xdc   : > { %4059 = vmatmul.mubr.msk.f32.vlgmr.msra.gmra.mrb[0].mxu0 %vm193_vm0, %v2164_v23  ;;  %v1893_v29 = vpop.permute.xlu1 %1892 }
  0xdd   : > { %v2460_v30 = vpop.permute.xlu0 %2459  ;;  %3912 = vmatmul.mubr.msk.f32.gmra.mrb[6].mxu1 %vm193_vm0, %v4669_v1  ;;  %2551 = vmatprep.mubr.f32.mxu0 %v4261_v2  ;;  %v1899_v31 = vsel %vm1896_vm7, %v4682_v3, %v1893_v29  ;;  %v1900_v32 = vsel %vm1896_vm7, %v1893_v29, %v1895_v13 }
  0xde   : > { %v2469_v33 = vsel %vm2467_vm9, %v2458_v27, %v2460_v30  ;;  %2056 = vmatprep.mubr.f32.mxu1 %v4261_v2  ;;  %3920 = vmatprep.subr.msk.mxu1 %vm200_vm1, %v1900_v32 }
  0xdf   : > { %3938 = vmatprep.subr.msk.mxu0 %vm200_vm1, %v2469_v33  ;;  %3921 = vmatpush1.msk.msra.mxu1 %vm200_vm1, %v1899_v31 }
  0xe0   : > { %v2446_v34 = vpop.permute.xlu1 %2445 }
  0xe1   : > { %v2456_v35 = vpop.permute.xlu0 %2455  ;;  %3922 = vmatmul.mubr.msk.f32.vlgmr.msra.gmra.mrb[4].mxu1 %vm193_vm0, %v4703_v12 }
  0xe2   : > { %v2468_v36 = vsel %vm2467_vm9, %v2456_v35, %v2458_v27  ;;  %2062 = vmatprep.mubr.f32.mxu1 %v4261_v2 }
  0xe3   : > { %3939 = vmatpush1.msk.msra.mxu0 %vm200_vm1, %v2468_v36 }
  0xe4   : > { %3940 = vmatmul.mubr.msk.f32.vlgmr.msra.gmra.mrb[2].mxu0 %vm193_vm0, %v2446_v34  ;;  %v2464_v37 = vpop.permute.xlu1 %2463 }
  0xe5   : > { %v2448_v38 = vpop.permute.xlu0 %2447  ;;  %3923 = vmatmul.mubr.msk.f32.gmra.mrb[6].mxu1 %vm193_vm0, %v4701_v11  ;;  %2557 = vmatprep.mubr.f32.mxu0 %v4261_v2 }
  0xe6   : > { %2340 = vmatprep.mubr.f32.mxu1 %v4261_v2 }
  0xe8   : > { %3941 = vmatmul.mubr.msk.f32.gmra.mrb[4].mxu0 %vm193_vm0, %v2448_v38  ;;  %v2177_v39 = vpop.permute.xlu1 %2176 }
  0xe9   : > { %v2466_v40 = vpop.permute.xlu0 %2465  ;;  %4063 = vmatprep.mubr.msk.f32.mxu0 %vm193_vm0, %v2446_v34  ;;  %v2183_v41 = vsel %vm2180_vm8, %v2175_v17, %v2177_v39  ;;  %v2184_v42 = vsel %vm2180_vm8, %v2177_v39, %v2179_v28  ;;  %vm3725_vm8 = vcmask 195584  }
  0xea   : > { %v2472_v43 = vsel %vm2467_vm9, %v2464_v37, %v2466_v40  ;;  %3931 = vmatprep.subr.msk.mxu1 %vm200_vm1, %v2184_v42 }
  0xeb   : > { %4061 = vmatprep.subr.msk.mxu0 %vm200_vm1, %v2472_v43  ;;  %3932 = vmatpush1.msk.msra.mxu1 %vm200_vm1, %v2183_v41 }
  0xec   : > { %4062 = vmatpush3.msk.msra.mxu0 %vm200_vm1, %v2472_v43  ;;  %v2748_v44 = vpop.permute.xlu1 %2747  ;;  %3933 = vmatmul.mubr.msk.f32.vlgmr.msra.gmra.mrb[4].mxu1 %vm193_vm0, %v2162_v20 }
  0xed   : > { %v2746_v45 = vpop.permute.xlu0 %2745  ;;  %4064 = vmatmul.mubr.msk.f32.vlgmr.msra.gmra.mrb[0].mxu0 %vm193_vm0, %v2448_v38  ;;  %2346 = vmatprep.mubr.f32.mxu1 %v4261_v2 }
  0xee   : > { %v2757_v46 = vsel %vm2755_vm10, %v2746_v45, %v2748_v44  ;;  %2839 = vmatprep.mubr.f32.mxu0 %v4261_v2 }
  0xef   : > { %3949 = vmatprep.subr.msk.mxu0 %vm200_vm1, %v2757_v46 }
  0xf0   : > { %v2734_v47 = vpop.permute.xlu1 %2733  ;;  %3934 = vmatmul.mubr.msk.f32.gmra.mrb[6].mxu1 %vm193_vm0, %v2164_v23 }
  0xf1   : > { %v2744_v48 = vpop.permute.xlu0 %2743  ;;  %2628 = vmatprep.mubr.f32.mxu1 %v4261_v2 }
  0xf2   : > { %v2756_v49 = vsel %vm2755_vm10, %v2744_v48, %v2746_v45 }
  0xf3   : > { %3950 = vmatpush1.msk.msra.mxu0 %vm200_vm1, %v2756_v49 }
  0xf4   : > { %3951 = vmatmul.mubr.msk.f32.vlgmr.msra.gmra.mrb[2].mxu0 %vm193_vm0, %v2734_v47  ;;  %v2736_v50 = vpop.permute.xlu1 %2735 }
  0xf5   : > { %v2462_v51 = vpop.permute.xlu0 %2461  ;;  %2845 = vmatprep.mubr.f32.mxu0 %v4261_v2 }
  0xf6   : > { %v2470_v52 = vsel %vm2467_vm9, %v2460_v30, %v2462_v51  ;;  %v2471_v53 = vsel %vm2467_vm9, %v2462_v51, %v2464_v37 }
  0xf7   : > { %3942 = vmatprep.subr.msk.mxu1 %vm200_vm1, %v2471_v53 }
  0xf8   : > { %3943 = vmatpush1.msk.msra.mxu1 %vm200_vm1, %v2470_v52  ;;  %3952 = vmatmul.mubr.msk.f32.gmra.mrb[4].mxu0 %vm193_vm0, %v2736_v50  ;;  %v2754_v54 = vpop.permute.xlu1 %2753 }
  0xf9   : > { %v2752_v55 = vpop.permute.xlu0 %2751  ;;  %3944 = vmatmul.mubr.msk.f32.vlgmr.msra.gmra.mrb[4].mxu1 %vm193_vm0, %v2446_v34  ;;  %4068 = vmatprep.mubr.msk.f32.mxu0 %vm193_vm0, %v2734_v47 }
  0xfa   : > { %v2760_v56 = vsel %vm2755_vm10, %v2752_v55, %v2754_v54  ;;  %2634 = vmatprep.mubr.f32.mxu1 %v4261_v2 }
  0xfb   : > { %4066 = vmatprep.subr.msk.mxu0 %vm200_vm1, %v2760_v56 }
  0xfc   : > { %4067 = vmatpush3.msk.msra.mxu0 %vm200_vm1, %v2760_v56  ;;  %v3036_v57 = vpop.permute.xlu1 %3035 }
  0xfd   : > { %v3034_v58 = vpop.permute.xlu0 %3033  ;;  %3945 = vmatmul.mubr.msk.f32.gmra.mrb[6].mxu1 %vm193_vm0, %v2448_v38  ;;  %4069 = vmatmul.mubr.msk.f32.vlgmr.msra.gmra.mrb[0].mxu0 %vm193_vm0, %v2736_v50 }
  0xfe   : > { %v3045_v59 = vsel %vm3043_vm11, %v3034_v58, %v3036_v57  ;;  %2916 = vmatprep.mubr.f32.mxu1 %v4261_v2  ;;  %3127 = vmatprep.mubr.f32.mxu0 %v4261_v2 }
  0xff   : > { %3960 = vmatprep.subr.msk.mxu0 %vm200_vm1, %v3045_v59 }
 0x100   : > { %v3032_v60 = vpop.permute.xlu1 %3031 }
 0x101   : > { %v2750_v61 = vpop.permute.xlu0 %2749  ;;  %v3044_v62 = vsel %vm3043_vm11, %v3032_v60, %v3034_v58 }
 0x102   : > { %v2758_v63 = vsel %vm2755_vm10, %v2748_v44, %v2750_v61  ;;  %v2759_v0 = vsel %vm2755_vm10, %v2750_v61, %v2752_v55  ;;  %3961 = vmatpush1.msk.msra.mxu0 %vm200_vm1, %v3044_v62  ;;  %vm3626_vm10 = vcmask 523520  }
 0x103   : > { %3953 = vmatprep.subr.msk.mxu1 %vm200_vm1, %v2759_v0 }
 0x104   : > { %3954 = vmatpush1.msk.msra.mxu1 %vm200_vm1, %v2758_v63  ;;  %v3024_v1 = vpop.permute.xlu1 %3023 }
 0x105   : > { %v3022_v3 = vpop.permute.xlu0 %3021  ;;  %3955 = vmatmul.mubr.msk.f32.vlgmr.msra.gmra.mrb[4].mxu1 %vm193_vm0, %v2734_v47 }
 0x106   : > { %3962 = vmatmul.mubr.msk.f32.vlgmr.msra.gmra.mrb[2].mxu0 %vm193_vm0, %v3022_v3  ;;  %2922 = vmatprep.mubr.f32.mxu1 %v4261_v2 }
 0x107   : > { %3133 = vmatprep.mubr.f32.mxu0 %v4261_v2 }
 0x108   : > { %v3042_v4 = vpop.permute.xlu1 %3041 }
 0x109   : > { %v3040_v5 = vpop.permute.xlu0 %3039  ;;  %3956 = vmatmul.mubr.msk.f32.gmra.mrb[6].mxu1 %vm193_vm0, %v2736_v50 }
 0x10a   : > { %v3048_v6 = vsel %vm3043_vm11, %v3040_v5, %v3042_v4  ;;  %3963 = vmatmul.mubr.msk.f32.gmra.mrb[4].mxu0 %vm193_vm0, %v3024_v1  ;;  %3204 = vmatprep.mubr.f32.mxu1 %v4261_v2 }
 0x10b   : > { %4071 = vmatprep.subr.msk.mxu0 %vm200_vm1, %v3048_v6  ;;  %4073 = vmatprep.mubr.msk.f32.mxu0 %vm193_vm0, %v3022_v3 }
 0x10c   : > { %4072 = vmatpush3.msk.msra.mxu0 %vm200_vm1, %v3048_v6  ;;  %v3322_v7 = vpop.permute.xlu1 %3321 }
 0x10d   : > { %v3038_v8 = vpop.permute.xlu0 %3037 }
 0x10e   : > { %v3046_v9 = vsel %vm3043_vm11, %v3036_v57, %v3038_v8  ;;  %v3047_v10 = vsel %vm3043_vm11, %v3038_v8, %v3040_v5  ;;  %4074 = vmatmul.mubr.msk.f32.vlgmr.msra.gmra.mrb[0].mxu0 %vm193_vm0, %v3024_v1  ;;  %vm3632_vm11 = vcmask 785920  }
 0x10f   : > { %3964 = vmatprep.subr.msk.mxu1 %vm200_vm1, %v3047_v10  ;;  %3415 = vmatprep.mubr.f32.mxu0 %v4261_v2 }
 0x110   : > { %3965 = vmatpush1.msk.msra.mxu1 %vm200_vm1, %v3046_v9  ;;  %v3320_v11 = vpop.permute.xlu1 %3319 }
 0x111   : > { %v3324_v12 = vpop.permute.xlu0 %3323  ;;  %3966 = vmatmul.mubr.msk.f32.vlgmr.msra.gmra.mrb[4].mxu1 %vm193_vm0, %v3022_v3  ;;  %v3332_v13 = vsel %vm3331_vm12, %v3320_v11, %v3322_v7 }
 0x112   : > { %v3333_v14 = vsel %vm3331_vm12, %v3322_v7, %v3324_v12  ;;  %3210 = vmatprep.mubr.f32.mxu1 %v4261_v2 }
 0x113   : > { %3971 = vmatprep.subr.msk.mxu0 %vm200_vm1, %v3333_v14 }
 0x114   : > { %3972 = vmatpush1.msk.msra.mxu0 %vm200_vm1, %v3332_v13  ;;  %v3326_v15 = vpop.permute.xlu1 %3325 }
 0x115   : > { %v3310_v16 = vpop.permute.xlu0 %3309  ;;  %3967 = vmatmul.mubr.msk.f32.gmra.mrb[6].mxu1 %vm193_vm0, %v3024_v1  ;;  %v3334_v20 = vsel %vm3331_vm12, %v3324_v12, %v3326_v15 }
 0x116   : > { %3973 = vmatmul.mubr.msk.f32.vlgmr.msra.gmra.mrb[2].mxu0 %vm193_vm0, %v3310_v16  ;;  %3492 = vmatprep.mubr.f32.mxu1 %v4261_v2 }
 0x117   : > { %3421 = vmatprep.mubr.f32.mxu0 %v4261_v2 }
 0x118   : > { %v3312_v17 = vpop.permute.xlu1 %3311 }
 0x119   : > { %v3328_v18 = vpop.permute.xlu0 %3327 }
 0x11a   : > { %v3335_v19 = vsel %vm3331_vm12, %v3326_v15, %v3328_v18  ;;  %3974 = vmatmul.mubr.msk.f32.gmra.mrb[4].mxu0 %vm193_vm0, %v3312_v17 }
 0x11b   : > { %3975 = vmatprep.subr.msk.mxu1 %vm200_vm1, %v3335_v19  ;;  %4078 = vmatprep.mubr.msk.f32.mxu0 %vm193_vm0, %v3310_v16 }
 0x11c   : > { %3976 = vmatpush1.msk.msra.mxu1 %vm200_vm1, %v3334_v20 }
 0x11d   : > { %v3330_v21 = vpop.permute.xlu0 %3329  ;;  %3977 = vmatmul.mubr.msk.f32.vlgmr.msra.gmra.mrb[4].mxu1 %vm193_vm0, %v3310_v16 }
 0x11e   : > { %v3336_v22 = vsel %vm3331_vm12, %v3328_v18, %v3330_v21  ;;  %3498 = vmatprep.mubr.f32.mxu1 %v4261_v2  ;;  %vm3637_vm12 = vcmask 1048320  }
 0x11f   : > { %4076 = vmatprep.subr.msk.mxu0 %vm200_vm1, %v3336_v22 }
 0x120   : > { %4077 = vmatpush3.msk.msra.mxu0 %vm200_vm1, %v3336_v22 }
 0x121   : > { %3978 = vmatmul.mubr.msk.f32.gmra.mrb[6].mxu1 %vm193_vm0, %v3312_v17  ;;  %4079 = vmatmul.mubr.msk.f32.vlgmr.msra.gmra.mrb[0].mxu0 %vm193_vm0, %v3312_v17 }
 0x129   : > { %v4860_v27 = vpop.permute.xlu1 %175 }
 0x12e   : > { %v4864_v30 = vpop.permute.xlu0 %180 }
 0x183   : > { %v845_v23 = vpop.f32.mrb[0].mxu1 }
 0x184   : > { %v847_v24 = vpop.f32.mrb[1].mxu1  ;;  %v4081_v28 = vadd.f32 %v845_v23, %v4860_v27 }
 0x185   : > { %v4083_v29 = vadd.f32 %v847_v24, %v4860_v27 }
 0x187   : > { %v851_v25 = vpop.f32.mrb[2].mxu1 }
 0x188   : > { %v853_v26 = vpop.f32.mrb[3].mxu1  ;;  %v4085_v34 = vadd.f32 %v851_v25, %v4864_v30 }
 0x189   : > { %v4087_v36 = vadd.f32 %v853_v26, %v4864_v30 }
 0x1e9   : > { %v3417_v2 = vpop.f32.mrb[2].mxu0 }
 0x1ea   : > { %v4082_v31 = vadd.f32 %v4081_v28, %v3417_v2  ;;  %v3419_v32 = vpop.f32.mrb[3].mxu0 }
 0x1eb   : > { %v4867_v33 = vadd.f32 %v4083_v29, %v3419_v32 }
 0x1ec   : > { %vm3590_vm13 = vcmp.ge.f32.partialorder %v4082_v31, 0.0  ;;  %v3600_v35 = vmul.f32 0.01, %v4082_v31 }
 0x1ed   : > { %v3423_v37 = vpop.f32.mrb[4].mxu0  ;;  %v3601_v60 = vmul.f32 0.01, %v4867_v33  ;;  %vm3591_vm3 = vcmp.ge.f32.partialorder %v4867_v33, 0.0 }
 0x1ee   : > { %v4876_v38 = vadd.f32 %v4085_v34, %v3423_v37  ;;  %v3425_v39 = vpop.f32.mrb[5].mxu0  ;;  %v3610_v40 = vsel %vm3590_vm13, %v4082_v31, %v3600_v35  ;;  %vm3661_vm13 = vcmask 949248  }
 0x1ef   : > { %v4878_v41 = vadd.f32 %v4087_v36, %v3425_v39  ;;  %3621 = vst.msk [vmem:[%s4873_s26] sm:$0xff] %vm3620_vm14, %v3610_v40  ;;  %v3611_v61 = vsel %vm3591_vm3, %v4867_v33, %v3601_v60 }
 0x1f0   : > { %v3494_v42 = vpop.f32.mrb[4].mxu1  ;;  %v3605_v62 = vmul.f32 0.01, %v4876_v38  ;;  %vm3595_vm4 = vcmp.ge.f32.partialorder %v4876_v38, 0.0 }
 0x1f1   : > { %v4089_v43 = vadd.f32 %v3494_v42, %v4860_v27  ;;  %v3496_v44 = vpop.f32.mrb[5].mxu1  ;;  %v3606_v63 = vmul.f32 0.01, %v4878_v41  ;;  %vm3596_vm5 = vcmp.ge.f32.partialorder %v4878_v41, 0.0 }
 0x1f2   : > { %v4090_v45 = vadd.f32 %v3496_v44, %v4860_v27  ;;  %v3615_v0 = vsel %vm3595_vm4, %v4876_v38, %v3605_v62 }
 0x1f3   : > { %vm3592_vm15 = vcmp.ge.f32.partialorder %v4089_v43, 0.0  ;;  %v3602_v46 = vmul.f32 0.01, %v4089_v43  ;;  %v3616_v1 = vsel %vm3596_vm5, %v4878_v41, %v3606_v63 }
 0x1f4   : > { %v3500_v47 = vpop.f32.mrb[6].mxu1  ;;  %v4884_v48 = vpop.f32.mrb[0].mxu0  ;;  %v3603_v49 = vmul.f32 0.01, %v4090_v45  ;;  %vm3593_vm0 = vcmp.ge.f32.partialorder %v4090_v45, 0.0 }
 0x1f5   : > { %v3502_v50 = vpop.f32.mrb[7].mxu1  ;;  %v3571_v51 = vpop.f32.mrb[1].mxu0  ;;  %v3612_v52 = vsel %vm3592_vm15, %v4089_v43, %v3602_v46  ;;  %v4091_v54 = vadd.f32 %v3500_v47, %v4864_v30  ;;  %v4093_v4 = vadd.f32 %v4884_v48, %v4864_v30  ;;  %vm3694_vm15 = vcmask 556032  }
 0x1f6   : > { %3712 = vrot.lane.b32.xlu1 %v3612_v52, %s4260_s18  ;;  %3721 = vrot.lane.b32.xlu0 %v3612_v52, %s4283_s13  ;;  %v3613_v53 = vsel %vm3593_vm0, %v4090_v45, %v3603_v49  ;;  %v4092_v56 = vadd.f32 %v3502_v50, %v4864_v30  ;;  %s4287_s18 = smov 52   ;;  %v4094_v3 = vadd.f32 %v3571_v51, %v4860_v27  ;;  %vm3703_vm0 = vcmask 818176  }
 0x1f7   : > { %v3607_v55 = vmul.f32 0.01, %v4091_v54  ;;  %vm3597_vm1 = vcmp.ge.f32.partialorder %v4091_v54, 0.0  ;;  %v3609_v6 = vmul.f32 0.01, %v4093_v4  ;;  %vm3599_vm7 = vcmp.ge.f32.partialorder %v4093_v4, 0.0 }
 0x1f8   : > { %v3608_v57 = vmul.f32 0.01, %v4092_v56  ;;  %vm3598_vm2 = vcmp.ge.f32.partialorder %v4092_v56, 0.0  ;;  %v3604_v5 = vmul.f32 0.01, %v4094_v3  ;;  %vm3594_vm6 = vcmp.ge.f32.partialorder %v4094_v3, 0.0 }
 0x1f9   : > { %v4893_v58 = vsel %vm3597_vm1, %v4091_v54, %v3607_v55  ;;  %v3619_v8 = vsel %vm3599_vm7, %v4093_v4, %v3609_v6  ;;  %vm3766_vm1 = vcmask 64512  }
 0x1fa   : > { %3707 = vrot.lane.b32.xlu0 %v3612_v52, %s4276_s10  ;;  %3723 = vrot.lane.b32.xlu1 %v3613_v53, %s4283_s13  ;;  %v3618_v59 = vsel %vm3598_vm2, %v4092_v56, %v3608_v57  ;;  %s4293_s10 = smov 16   ;;  %v3614_v7 = vsel %vm3594_vm6, %v4094_v3, %v3604_v5  ;;  %vm3775_vm2 = vcmask 326656  }
 0x1fe   : > { %3692 = vrot.lane.b32.xlu0 %v3612_v52, %s4284_s28  ;;  %3745 = vrot.lane.b32.xlu1 %v3613_v53, %s4285_s30 }
 0x202   : > { %3762 = vrot.lane.b32.xlu0 %v3613_v53, %s4286_s5  ;;  %3753 = vrot.lane.b32.xlu1 %v3613_v53, %s4270_s4  ;;  %s4289_s4 = smov 40  }
 0x206   : > { %3737 = vrot.lane.b32.xlu0 %v3613_v53, %s4287_s18  ;;  %3730 = vrot.lane.b32.xlu1 %v4893_v58, %s4275_s9 }
 0x20a   : > { %3701 = vrot.lane.b32.xlu0 %v4893_v58, %s4274_s8  ;;  %3749 = vrot.lane.b32.xlu1 %v3618_v59, %s4268_s29 }
 0x20e   : > { %3716 = vrot.lane.b32.xlu0 %v4893_v58, %s4288_s6  ;;  %3741 = vrot.lane.b32.xlu1 %v3618_v59, %s4282_s17 }
 0x212   : > { %3629 = vrot.lane.b32.xlu1 %v3610_v40, %s4288_s6  ;;  %3732 = vrot.lane.b32.xlu0 %v3618_v59, %s4275_s9 }
 0x216   : > { %3639 = vrot.lane.b32.xlu1 %v3610_v40, %s4275_s9  ;;  %3771 = vrot.lane.b32.xlu0 %v3618_v59, %s4289_s4  ;;  %s4292_s9 = smov 60  }
 0x21a   : > { %3648 = vrot.lane.b32.xlu1 %v3610_v40, %s4282_s17  ;;  %3665 = vrot.lane.b32.xlu0 %v3611_v61, %s4268_s29  ;;  %s4291_s29 = smov 32  }
 0x21e   : > { %3681 = vrot.lane.b32.xlu1 %v3611_v61, %s4289_s4  ;;  %3650 = vrot.lane.b32.xlu0 %v3611_v61, %s4282_s17 }
 0x222   : > { %3690 = vrot.lane.b32.xlu1 %v3611_v61, %s4284_s28  ;;  %3673 = vrot.lane.b32.xlu0 %v3611_v61, %s4290_s7 }
 0x226   : > { %3623 = vrot.lane.b32.xlu1 %v3615_v0, %s4291_s29  ;;  %3634 = vrot.lane.b32.xlu0 %v3615_v0, %s4292_s9 }
 0x22a   : > { %3669 = vrot.lane.b32.xlu1 %v3616_v1, %s4293_s10  ;;  %3643 = vrot.lane.b32.xlu0 %v3615_v0, %s4280_s15  ;;  %s4296_s15 = smov 36  }
 0x22e   : > { %3659 = vrot.lane.b32.xlu1 %v3616_v1, %s4266_s27  ;;  %3657 = vrot.lane.b32.xlu0 %v3615_v0, %s4266_s27 }
 0x232   : > { %3699 = vrot.lane.b32.xlu1 %v3616_v1, %s4274_s8  ;;  %3685 = vrot.lane.b32.xlu0 %v3616_v1, %s4294_s11 }
 0x236   : > { %3677 = vrot.lane.b32.xlu1 %v3616_v1, %s4295_s14  ;;  %3779 = vrot.lane.b32.xlu0 %v3614_v7, %s4296_s15 }
 0x23a   : > { %3773 = vrot.lane.b32.xlu1 %v3619_v8, %s4289_s4  ;;  %3757 = vrot.lane.b32.xlu0 %v3618_v59, %s4290_s7 }
 0x23e   : > { %3764 = vrot.lane.b32.xlu1 %v3614_v7, %s4286_s5 }
 0x242   : > { %3783 = vrot.lane.b32.xlu1 %v3619_v8, %s4284_s28 }
 0x268   : > { %v3713_v9 = vpop.permute.xlu1 %3712  ;;  %v3722_v10 = vpop.permute.xlu0 %3721 }
 0x26c   : > { %v3708_v11 = vpop.permute.xlu0 %3707  ;;  %v3724_v12 = vpop.permute.xlu1 %3723 }
 0x26d   : > { %3710 = vst.msk [vmem:[%s4873_s26 + $0x20] sm:$0xff] %vm3620_vm14, %v3708_v11  ;;  %v3726_v13 = vsel %vm3725_vm8, %v3722_v10, %v3724_v12 }
 0x26e   : > { %3711 = vst.msk [vmem:[%s4873_s26 + $0x20] sm:$0xff] %vm3626_vm10, %v4893_v58 }
 0x26f   : > { %3728 = vst.msk [vmem:[%s4873_s26 + $0x28] sm:$0xff] %vm3620_vm14, %v3726_v13 }
 0x270   : > { %3715 = vst.msk [vmem:[%s4873_s26 + $0x20] sm:$0xff] %vm3632_vm11, %v3713_v9  ;;  %v3693_v14 = vpop.permute.xlu0 %3692  ;;  %v3746_v15 = vpop.permute.xlu1 %3745 }
 0x271   : > { %3748 = vst.msk [vmem:[%s4873_s26 + $0x30] sm:$0xff] %vm3620_vm14, %v3746_v15 }
 0x274   : > { %v4942_v16 = vpop.permute.xlu0 %3762  ;;  %v3754_v17 = vpop.permute.xlu1 %3753 }
 0x278   : > { %v3738_v18 = vpop.permute.xlu0 %3737  ;;  %v3731_v19 = vpop.permute.xlu1 %3730 }
 0x27c   : > { %v3702_v20 = vpop.permute.xlu0 %3701  ;;  %v3750_v21 = vpop.permute.xlu1 %3749 }
 0x27d   : > { %3752 = vst.msk [vmem:[%s4873_s26 + $0x30] sm:$0xff] %vm3626_vm10, %v3750_v21 }
 0x27e   : > { %3756 = vst.msk [vmem:[%s4873_s26 + $0x30] sm:$0xff] %vm3632_vm11, %v3754_v17 }
 0x280   : > { %v3717_v22 = vpop.permute.xlu0 %3716  ;;  %v3742_v23 = vpop.permute.xlu1 %3741 }
 0x281   : > { %3719 = vst.msk [vmem:[%s4873_s26 + $0x20] sm:$0xff] %vm3637_vm12, %v3717_v22 }
 0x284   : > { %v3630_v24 = vpop.permute.xlu1 %3629  ;;  %v3733_v25 = vpop.permute.xlu0 %3732 }
 0x285   : > { %v3734_v26 = vsel %vm2467_vm9, %v3731_v19, %v3733_v25  ;;  %vm3652_vm9 = vcmask 687104  }
 0x286   : > { %3736 = vst.msk [vmem:[%s4873_s26 + $0x28] sm:$0xff] %vm3626_vm10, %v3734_v26 }
 0x287   : > { %3740 = vst.msk [vmem:[%s4873_s26 + $0x28] sm:$0xff] %vm3632_vm11, %v3738_v18 }
 0x288   : > { %3744 = vst.msk [vmem:[%s4873_s26 + $0x28] sm:$0xff] %vm3637_vm12, %v3742_v23  ;;  %v3640_v27 = vpop.permute.xlu1 %3639  ;;  %v3772_v28 = vpop.permute.xlu0 %3771 }
 0x289   : > { %3642 = vst.msk [vmem:[%s4873_s26 + $0x8] sm:$0xff] %vm3620_vm14, %v3640_v27 }
 0x28c   : > { %v3649_v29 = vpop.permute.xlu1 %3648  ;;  %v3666_v30 = vpop.permute.xlu0 %3665 }
 0x28d   : > { %3668 = vst.msk [vmem:[%s4873_s26 + $0x10] sm:$0xff] %vm3620_vm14, %v3666_v30 }
 0x290   : > { %v3682_v2 = vpop.permute.xlu1 %3681  ;;  %v3651_v31 = vpop.permute.xlu0 %3650 }
 0x291   : > { %3684 = vst.msk [vmem:[%s4873_s26 + $0x18] sm:$0xff] %vm3620_vm14, %v3682_v2  ;;  %v3653_v38 = vsel %vm3652_vm9, %v3649_v29, %v3651_v31 }
 0x294   : > { %v3691_v32 = vpop.permute.xlu1 %3690  ;;  %v3674_v33 = vpop.permute.xlu0 %3673 }
 0x295   : > { %v3695_v44 = vsel %vm3694_vm15, %v3691_v32, %v3693_v14 }
 0x298   : > { %v3624_v34 = vpop.permute.xlu1 %3623  ;;  %v3635_v35 = vpop.permute.xlu0 %3634 }
 0x299   : > { %3627 = vst.msk [vmem:[%s4873_s26] sm:$0xff] %vm3626_vm10, %v3624_v34 }
 0x29a   : > { %3633 = vst.msk [vmem:[%s4873_s26] sm:$0xff] %vm3632_vm11, %v3630_v24 }
 0x29b   : > { %3638 = vst.msk [vmem:[%s4873_s26] sm:$0xff] %vm3637_vm12, %v3635_v35 }
 0x29c   : > { %v3670_v36 = vpop.permute.xlu1 %3669  ;;  %v3644_v37 = vpop.permute.xlu0 %3643 }
 0x29d   : > { %3672 = vst.msk [vmem:[%s4873_s26 + $0x10] sm:$0xff] %vm3626_vm10, %v3670_v36  ;;  %3646 = vst.msk [vmem:[%s4873_s26 + $0x8] sm:$0xff] %vm3626_vm10, %v3644_v37 }
 0x29e   : > { %3676 = vst.msk [vmem:[%s4873_s26 + $0x10] sm:$0xff] %vm3632_vm11, %v3674_v33  ;;  %3655 = vst.msk [vmem:[%s4873_s26 + $0x8] sm:$0xff] %vm3632_vm11, %v3653_v38 }
 0x2a0   : > { %v3660_v39 = vpop.permute.xlu1 %3659  ;;  %v3658_v40 = vpop.permute.xlu0 %3657 }
 0x2a1   : > { %v3662_v41 = vsel %vm3661_vm13, %v3658_v40, %v3660_v39 }
 0x2a2   : > { %3664 = vst.msk [vmem:[%s4873_s26 + $0x8] sm:$0xff] %vm3637_vm12, %v3662_v41 }
 0x2a4   : > { %v3700_v42 = vpop.permute.xlu1 %3699  ;;  %v3686_v43 = vpop.permute.xlu0 %3685 }
 0x2a5   : > { %v3704_v45 = vsel %vm3703_vm0, %v3700_v42, %v3702_v20  ;;  %3688 = vst.msk [vmem:[%s4873_s26 + $0x18] sm:$0xff] %vm3626_vm10, %v3686_v43 }
 0x2a6   : > { %3697 = vst.msk [vmem:[%s4873_s26 + $0x18] sm:$0xff] %vm3632_vm11, %v3695_v44 }
 0x2a7   : > { %3706 = vst.msk [vmem:[%s4873_s26 + $0x18] sm:$0xff] %vm3637_vm12, %v3704_v45 }
 0x2a8   : > { %v3678_v46 = vpop.permute.xlu1 %3677  ;;  %v3780_v47 = vpop.permute.xlu0 %3779 }
 0x2a9   : > { %3680 = vst.msk [vmem:[%s4873_s26 + $0x10] sm:$0xff] %vm3637_vm12, %v3678_v46 }
 0x2ac   : > { %v3774_v48 = vpop.permute.xlu1 %3773  ;;  %v3758_v49 = vpop.permute.xlu0 %3757 }
 0x2ad   : > { %3760 = vst.msk [vmem:[%s4873_s26 + $0x30] sm:$0xff] %vm3637_vm12, %v3758_v49  ;;  %v3776_v52 = vsel %vm3775_vm2, %v3772_v28, %v3774_v48 }
 0x2b0   : > { %v3765_v50 = vpop.permute.xlu1 %3764 }
 0x2b1   : > { %v3767_v51 = vsel %vm3766_vm1, %v4942_v16, %v3765_v50 }
 0x2b2   : > { %3769 = vst.msk [vmem:[%s4873_s26 + $0x38] sm:$0xff] %vm3620_vm14, %v3767_v51 }
 0x2b3   : > { %3778 = vst.msk [vmem:[%s4873_s26 + $0x38] sm:$0xff] %vm3626_vm10, %v3776_v52 }
 0x2b4   : > { %3782 = vst.msk [vmem:[%s4873_s26 + $0x38] sm:$0xff] %vm3632_vm11, %v3780_v47  ;;  %v3784_v53 = vpop.permute.xlu1 %3783 }
 0x2b5   : > { %3786 = vst.msk [vmem:[%s4873_s26 + $0x38] sm:$0xff] %vm3637_vm12, %v3784_v53 }
 0x2b6 PF: > { %s13_s12 = sadd.s32 1, %s4258_s12  }
 0x2b7   : > { %p10_p4 = scmp.ge.s32.totalorder %s13_s12, 4  }
 0x2b9   :  { %12 = sbr.rel (!%p10_p4) target bundleno = 1 (0x1), region = 62 }

</bundles_post_ra>
